<compile_context>
chip_gen: v5e
topology: v5e:2x2
jax: 0.10.0
libtpu: 0.0.40
codegen_flags: <defaults>
</compile_context>

<pallas_src>
import functools

import jax
import jax.numpy as jnp
from jax.experimental import pallas as pl
from jax.experimental.pallas import tpu as pltpu

# ----------------------------- model sizes ---------------------------------
N_CLASS = 16     # vocabulary / output classes
EMB_SIZE = 8     # embedding dim
N_HIDDEN = 32    # hidden dim
BATCH = 2
SEQ = 8


# ----------------------------- fused Pallas kernel -------------------------
def fused_double_lstm_kernel(ids_ref,                 # VMEM (T*B, 1) int32, time-major flat
                             g1_ref,                  # VMEM (n_class, 4H)  = C @ Wx1 + b1
                             wh1_ref,                 # VMEM (H, 4H)
                             w2_ref,                  # VMEM (2H, 4H)       = [Wx2; Wh2]
                             bx2_ref,                 # VMEM (1, 4H)
                             wf_ref, bf_ref,          # (H, n_class), (1, n_class)
                             out_ref,                 # VMEM (B, n_class)
                             *, seq_len, batch, hidden, n_class):
    T, B, H = seq_len, batch, hidden
    TB = T * B

    # ---- embedding + layer-1 input projection as ONE small MXU matmul ------
    # one-hot(ids) @ G1  ==  (C @ Wx1 + b1)[ids]   -> (T*B, 4H)
    ids = ids_ref[...]                                              # (TB, 1) int32
    lane = jax.lax.broadcasted_iota(jnp.int32, (TB, n_class), 1)    # (TB, n_class)
    onehot = (lane == ids).astype(jnp.float32)
    gx1 = jnp.dot(onehot, g1_ref[...],
                  preferred_element_type=jnp.float32)               # (TB, 4H)

    wh1 = wh1_ref[...]
    w2 = w2_ref[...]
    bx2 = bx2_ref[...]

    def lstm_step(g, c):
        # Two full-vreg transcendentals instead of four quarter-vreg ones.
        sg = jax.nn.sigmoid(g)                                      # (B, 4H)
        th = jnp.tanh(g)                                            # (B, 4H)
        ft = sg[:, 0 * H:1 * H]
        it = sg[:, 1 * H:2 * H]
        ot = sg[:, 2 * H:3 * H]
        cp = th[:, 3 * H:4 * H]
        c_new = ft * c + it * cp
        h_new = ot * jnp.tanh(c_new)
        return h_new, c_new

    zeros = jnp.zeros((B, H), jnp.float32)
    h1, c1 = zeros, zeros
    h2, c2 = zeros, zeros
    h1_wave = zeros     # layer-1 output waiting to be consumed by layer-2

    # ---- wavefront: layer-1 step t and layer-2 step t-1 per iteration ------
    for t in range(T + 1):
        if t >= 1:
            # layer-2 step t-1: input is h1 at time t-1 (h1_wave), recurrent
            # state h2/c2.  Input + recurrent projection fused in one matmul.
            lhs2 = jnp.concatenate([h1_wave, h2], axis=1)           # (B, 2H)
            g2 = jnp.dot(lhs2, w2,
                         preferred_element_type=jnp.float32) + bx2  # (B, 4H)
            h2, c2 = lstm_step(g2, c2)
        if t < T:
            # layer-1 step t: precomputed input gates + recurrent projection.
            g1 = gx1[t * B:(t + 1) * B, :] + jnp.dot(
                h1, wh1, preferred_element_type=jnp.float32)        # (B, 4H)
            h1, c1 = lstm_step(g1, c1)
            h1_wave = h1

    # ---- final linear: only the last layer-2 hidden state is needed --------
    out_ref[...] = (jnp.dot(h2, wf_ref[...],
                            preferred_element_type=jnp.float32) + bf_ref[...])


# ----------------------------- wrapper --------------------------------------
def _fuse_lstm_params(p):
    """Concatenate the 4 gate weights into 128-lane-wide fused matrices."""
    wx = jnp.concatenate([p["W_fx"], p["W_ix"], p["W_ox"], p["W_ax"]], axis=1)
    wh = jnp.concatenate([p["W_aa"]] * 4, axis=1)
    bx = jnp.concatenate([p["b_f"] + p["b_a"], p["b_i"] + p["b_a"],
                          p["b_o"] + p["b_a"], p["b_a"]], axis=1)
    return wx, wh, bx


@jax.jit
def my_module_double_lstm(X, params):
    """X: (B, T) int32 token ids  ->  (B, n_class) float32 logits."""
    B, T = X.shape
    H = params["lstm1"]["W_aa"].shape[0]
    n_class = params["W"].shape[1]
    assert 4 * H == 128, "kernel assumes H=32 so the fused gate block is 128-lane aligned"

    wx1, wh1, bx1 = _fuse_lstm_params(params["lstm1"])
    wx2, wh2, bx2 = _fuse_lstm_params(params["lstm2"])

    # Fold the embedding into the layer-1 gate table: G1[k] = C[k] @ Wx1 + b1.
    g1 = params["C"].astype(jnp.float32) @ wx1 + bx1            # (n_class, 4H)
    # Layer-2 input + recurrent weights stacked for the per-step fused matmul.
    w2 = jnp.concatenate([wx2, wh2], axis=0)                    # (2H, 4H)

    # Token ids, flattened time-major (row i = t*B + b) — matches X.transpose(0,1).
    ids_tm = jnp.transpose(X).reshape(T * B, 1).astype(jnp.int32)

    kernel = functools.partial(fused_double_lstm_kernel,
                               seq_len=T, batch=B, hidden=H, n_class=n_class)
    vmem = pl.BlockSpec(memory_space=pltpu.MemorySpace.VMEM)

    return pl.pallas_call(
        kernel,
        out_shape=jax.ShapeDtypeStruct((B, n_class), jnp.float32),
        in_specs=[vmem] * 7,
        out_specs=vmem,
    )(ids_tm, g1, wh1, w2, bx2, params["W"], params["b"])


# ----------------------------- parameters -----------------------------------
def init_params(key):
    """Deterministic synthetic parameters.

    Linear weights ~ small random, stored (in_dim, out_dim) so the kernel does
    x @ W (same math as PyTorch's x @ W.T with W stored (out, in)); bias
    Parameters are all ones, matching torch.ones([...]) in the module.
    """
    ks = jax.random.split(key, 16)

    def w(k, shape):
        return jax.random.normal(k, shape, dtype=jnp.float32) * 0.1

    def lstm_params(kset, d_in, h):
        return {
            "W_fx": w(kset[0], (d_in, h)),
            "W_ix": w(kset[1], (d_in, h)),
            "W_ox": w(kset[2], (d_in, h)),
            "W_ax": w(kset[3], (d_in, h)),
            "W_aa": w(kset[4], (h, h)),
            "b_f": jnp.ones((1, h), jnp.float32),
            "b_i": jnp.ones((1, h), jnp.float32),
            "b_o": jnp.ones((1, h), jnp.float32),
            "b_a": jnp.ones((1, h), jnp.float32),
        }

    return {
        "C": w(ks[0], (N_CLASS, EMB_SIZE)),                 # embedding table
        "lstm1": lstm_params(ks[1:6], EMB_SIZE, N_HIDDEN),
        "lstm2": lstm_params(ks[6:11], N_HIDDEN, N_HIDDEN),
        "W": w(ks[11], (N_HIDDEN, N_CLASS)),
        "b": jnp.ones((1, N_CLASS), jnp.float32),
    }


# ----------------------------- plain-JAX reference --------------------------
def reference(X, params):
    emb = params["C"][X]                                    # (B, T, E)
    x_seq = jnp.transpose(emb, (1, 0, 2)).astype(jnp.float32)

    def layer(xs, p):
        T, B, _ = xs.shape
        H = p["W_aa"].shape[0]
        h = jnp.zeros((B, H), jnp.float32)
        c = jnp.zeros((B, H), jnp.float32)
        outs = []
        for t in range(T):
            x = xs[t]
            hh = h @ p["W_aa"] + p["b_a"]
            ft = jax.nn.sigmoid(x @ p["W_fx"] + p["b_f"] + hh)
            it = jax.nn.sigmoid(x @ p["W_ix"] + p["b_i"] + hh)
            ot = jax.nn.sigmoid(x @ p["W_ox"] + p["b_o"] + hh)
            cp = jnp.tanh(x @ p["W_ax"] + hh)
            c = ft * c + it * cp
            h = ot * jnp.tanh(c)
            outs.append(h)
        return jnp.stack(outs), h

    o1, _ = layer(x_seq, params["lstm1"])
    o2, _ = layer(o1, params["lstm2"])
    return o2[-1] @ params["W"] + params["b"]


# ----------------------------- main ------------------------------------------
if __name__ == "__main__":
    key = jax.random.PRNGKey(0)
    k_param, k_input = jax.random.split(key)

    params = init_params(k_param)
    X = jax.random.randint(k_input, (BATCH, SEQ), 0, N_CLASS, dtype=jnp.int32)

    out = my_module_double_lstm(X, params)
    out = jax.block_until_ready(out)

    ref = reference(X, params)
    assert out.shape == (BATCH, N_CLASS), out.shape
    assert jnp.allclose(out, ref, atol=1e-4, rtol=1e-4), (
        f"mismatch: max abs diff {jnp.max(jnp.abs(out - ref))}")

    print("KERNEL_OK")
</pallas_src>

<mosaic_0001>
module attributes {stable_mosaic.version = 11 : i64} {
  func.func @fused_double_lstm_kernel(%arg0: memref<16x1xi32, #tpu.memory_space<vmem>>, %arg1: memref<16x128xf32, #tpu.memory_space<vmem>>, %arg2: memref<32x128xf32, #tpu.memory_space<vmem>>, %arg3: memref<64x128xf32, #tpu.memory_space<vmem>>, %arg4: memref<1x128xf32, #tpu.memory_space<vmem>>, %arg5: memref<32x16xf32, #tpu.memory_space<vmem>>, %arg6: memref<1x16xf32, #tpu.memory_space<vmem>>, %arg7: memref<2x16xf32, #tpu.memory_space<vmem>>) attributes {dimension_semantics = [], scalar_prefetch = 0 : i64, scratch_operands = 0 : i64, tpu.core_type = #tpu.core_type<tc>} {
    %c0 = arith.constant 0 : index
    %c0_0 = arith.constant 0 : index
    %0 = vector.load %arg0[%c0, %c0_0] : memref<16x1xi32, #tpu.memory_space<vmem>>, vector<16x1xi32>
    %1 = tpu.iota {dimensions = array<i32: 1>} : vector<16x16xi32>
    %2 = vector.broadcast %0 : vector<16x1xi32> to vector<16x16xi32>
    %3 = arith.cmpi eq, %1, %2 : vector<16x16xi32>
    %4 = arith.extui %3 : vector<16x16xi1> to vector<16x16xi32>
    %5 = arith.sitofp %4 : vector<16x16xi32> to vector<16x16xf32>
    %c0_1 = arith.constant 0 : index
    %c0_2 = arith.constant 0 : index
    %6 = vector.load %arg1[%c0_1, %c0_2] : memref<16x128xf32, #tpu.memory_space<vmem>>, vector<16x128xf32>
    %cst = arith.constant dense<0.000000e+00> : vector<16x128xf32>
    %7 = tpu.matmul %5, %6, %cst {dimension_numbers = #tpu.dot_dimension_numbers<[1], [0], [0], [1], [0, 0, 1, 1], [], []>} : vector<16x16xf32>, vector<16x128xf32>, vector<16x128xf32> -> vector<16x128xf32>
    %c0_3 = arith.constant 0 : index
    %c0_4 = arith.constant 0 : index
    %8 = vector.load %arg2[%c0_3, %c0_4] : memref<32x128xf32, #tpu.memory_space<vmem>>, vector<32x128xf32>
    %c0_5 = arith.constant 0 : index
    %c0_6 = arith.constant 0 : index
    %9 = vector.load %arg3[%c0_5, %c0_6] : memref<64x128xf32, #tpu.memory_space<vmem>>, vector<64x128xf32>
    %c0_7 = arith.constant 0 : index
    %c0_8 = arith.constant 0 : index
    %10 = vector.load %arg4[%c0_7, %c0_8] : memref<1x128xf32, #tpu.memory_space<vmem>>, vector<1x128xf32>
    %cst_9 = arith.constant 0.000000e+00 : f32
    %11 = vector.broadcast %cst_9 : f32 to vector<2x32xf32>
    %12 = vector.extract_strided_slice %7 {offsets = [0, 0], sizes = [2, 128], strides = [1, 1]} : vector<16x128xf32> to vector<2x128xf32>
    %cst_10 = arith.constant dense<0.000000e+00> : vector<2x128xf32>
    %13 = tpu.matmul %11, %8, %cst_10 {dimension_numbers = #tpu.dot_dimension_numbers<[1], [0], [0], [1], [0, 0, 1, 1], [], []>} : vector<2x32xf32>, vector<32x128xf32>, vector<2x128xf32> -> vector<2x128xf32>
    %14 = arith.addf %12, %13 : vector<2x128xf32>
    %15 = arith.negf %14 : vector<2x128xf32>
    %16 = math.exp %15 : vector<2x128xf32>
    %cst_11 = arith.constant 1.000000e+00 : f32
    %17 = vector.broadcast %cst_11 : f32 to vector<2x128xf32>
    %18 = arith.addf %17, %16 : vector<2x128xf32>
    %19 = arith.divf %17, %18 : vector<2x128xf32>
    %20 = math.tanh %14 : vector<2x128xf32>
    %21 = vector.extract_strided_slice %19 {offsets = [0, 0], sizes = [2, 32], strides = [1, 1]} : vector<2x128xf32> to vector<2x32xf32>
    %22 = vector.extract_strided_slice %19 {offsets = [0, 32], sizes = [2, 32], strides = [1, 1]} : vector<2x128xf32> to vector<2x32xf32>
    %23 = vector.extract_strided_slice %19 {offsets = [0, 64], sizes = [2, 32], strides = [1, 1]} : vector<2x128xf32> to vector<2x32xf32>
    %24 = vector.extract_strided_slice %20 {offsets = [0, 96], sizes = [2, 32], strides = [1, 1]} : vector<2x128xf32> to vector<2x32xf32>
    %25 = arith.mulf %21, %11 : vector<2x32xf32>
    %26 = arith.mulf %22, %24 : vector<2x32xf32>
    %27 = arith.addf %25, %26 : vector<2x32xf32>
    %28 = math.tanh %27 : vector<2x32xf32>
    %29 = arith.mulf %23, %28 : vector<2x32xf32>
    %30 = tpu.concatenate %29, %11 in 1 : vector<2x32xf32>, vector<2x32xf32> -> vector<2x64xf32>
    %cst_12 = arith.constant dense<0.000000e+00> : vector<2x128xf32>
    %31 = tpu.matmul %30, %9, %cst_12 {dimension_numbers = #tpu.dot_dimension_numbers<[1], [0], [0], [1], [0, 0, 1, 1], [], []>} : vector<2x64xf32>, vector<64x128xf32>, vector<2x128xf32> -> vector<2x128xf32>
    %32 = vector.broadcast %10 : vector<1x128xf32> to vector<2x128xf32>
    %33 = arith.addf %31, %32 : vector<2x128xf32>
    %34 = arith.negf %33 : vector<2x128xf32>
    %35 = math.exp %34 : vector<2x128xf32>
    %cst_13 = arith.constant 1.000000e+00 : f32
    %36 = vector.broadcast %cst_13 : f32 to vector<2x128xf32>
    %37 = arith.addf %36, %35 : vector<2x128xf32>
    %38 = arith.divf %36, %37 : vector<2x128xf32>
    %39 = math.tanh %33 : vector<2x128xf32>
    %40 = vector.extract_strided_slice %38 {offsets = [0, 0], sizes = [2, 32], strides = [1, 1]} : vector<2x128xf32> to vector<2x32xf32>
    %41 = vector.extract_strided_slice %38 {offsets = [0, 32], sizes = [2, 32], strides = [1, 1]} : vector<2x128xf32> to vector<2x32xf32>
    %42 = vector.extract_strided_slice %38 {offsets = [0, 64], sizes = [2, 32], strides = [1, 1]} : vector<2x128xf32> to vector<2x32xf32>
    %43 = vector.extract_strided_slice %39 {offsets = [0, 96], sizes = [2, 32], strides = [1, 1]} : vector<2x128xf32> to vector<2x32xf32>
    %44 = arith.mulf %40, %11 : vector<2x32xf32>
    %45 = arith.mulf %41, %43 : vector<2x32xf32>
    %46 = arith.addf %44, %45 : vector<2x32xf32>
    %47 = math.tanh %46 : vector<2x32xf32>
    %48 = arith.mulf %42, %47 : vector<2x32xf32>
    %49 = vector.extract_strided_slice %7 {offsets = [2, 0], sizes = [2, 128], strides = [1, 1]} : vector<16x128xf32> to vector<2x128xf32>
    %cst_14 = arith.constant dense<0.000000e+00> : vector<2x128xf32>
    %50 = tpu.matmul %29, %8, %cst_14 {dimension_numbers = #tpu.dot_dimension_numbers<[1], [0], [0], [1], [0, 0, 1, 1], [], []>} : vector<2x32xf32>, vector<32x128xf32>, vector<2x128xf32> -> vector<2x128xf32>
    %51 = arith.addf %49, %50 : vector<2x128xf32>
    %52 = arith.negf %51 : vector<2x128xf32>
    %53 = math.exp %52 : vector<2x128xf32>
    %cst_15 = arith.constant 1.000000e+00 : f32
    %54 = vector.broadcast %cst_15 : f32 to vector<2x128xf32>
    %55 = arith.addf %54, %53 : vector<2x128xf32>
    %56 = arith.divf %54, %55 : vector<2x128xf32>
    %57 = math.tanh %51 : vector<2x128xf32>
    %58 = vector.extract_strided_slice %56 {offsets = [0, 0], sizes = [2, 32], strides = [1, 1]} : vector<2x128xf32> to vector<2x32xf32>
    %59 = vector.extract_strided_slice %56 {offsets = [0, 32], sizes = [2, 32], strides = [1, 1]} : vector<2x128xf32> to vector<2x32xf32>
    %60 = vector.extract_strided_slice %56 {offsets = [0, 64], sizes = [2, 32], strides = [1, 1]} : vector<2x128xf32> to vector<2x32xf32>
    %61 = vector.extract_strided_slice %57 {offsets = [0, 96], sizes = [2, 32], strides = [1, 1]} : vector<2x128xf32> to vector<2x32xf32>
    %62 = arith.mulf %58, %27 : vector<2x32xf32>
    %63 = arith.mulf %59, %61 : vector<2x32xf32>
    %64 = arith.addf %62, %63 : vector<2x32xf32>
    %65 = math.tanh %64 : vector<2x32xf32>
    %66 = arith.mulf %60, %65 : vector<2x32xf32>
    %67 = tpu.concatenate %66, %48 in 1 : vector<2x32xf32>, vector<2x32xf32> -> vector<2x64xf32>
    %cst_16 = arith.constant dense<0.000000e+00> : vector<2x128xf32>
    %68 = tpu.matmul %67, %9, %cst_16 {dimension_numbers = #tpu.dot_dimension_numbers<[1], [0], [0], [1], [0, 0, 1, 1], [], []>} : vector<2x64xf32>, vector<64x128xf32>, vector<2x128xf32> -> vector<2x128xf32>
    %69 = vector.broadcast %10 : vector<1x128xf32> to vector<2x128xf32>
    %70 = arith.addf %68, %69 : vector<2x128xf32>
    %71 = arith.negf %70 : vector<2x128xf32>
    %72 = math.exp %71 : vector<2x128xf32>
    %cst_17 = arith.constant 1.000000e+00 : f32
    %73 = vector.broadcast %cst_17 : f32 to vector<2x128xf32>
    %74 = arith.addf %73, %72 : vector<2x128xf32>
    %75 = arith.divf %73, %74 : vector<2x128xf32>
    %76 = math.tanh %70 : vector<2x128xf32>
    %77 = vector.extract_strided_slice %75 {offsets = [0, 0], sizes = [2, 32], strides = [1, 1]} : vector<2x128xf32> to vector<2x32xf32>
    %78 = vector.extract_strided_slice %75 {offsets = [0, 32], sizes = [2, 32], strides = [1, 1]} : vector<2x128xf32> to vector<2x32xf32>
    %79 = vector.extract_strided_slice %75 {offsets = [0, 64], sizes = [2, 32], strides = [1, 1]} : vector<2x128xf32> to vector<2x32xf32>
    %80 = vector.extract_strided_slice %76 {offsets = [0, 96], sizes = [2, 32], strides = [1, 1]} : vector<2x128xf32> to vector<2x32xf32>
    %81 = arith.mulf %77, %46 : vector<2x32xf32>
    %82 = arith.mulf %78, %80 : vector<2x32xf32>
    %83 = arith.addf %81, %82 : vector<2x32xf32>
    %84 = math.tanh %83 : vector<2x32xf32>
    %85 = arith.mulf %79, %84 : vector<2x32xf32>
    %86 = vector.extract_strided_slice %7 {offsets = [4, 0], sizes = [2, 128], strides = [1, 1]} : vector<16x128xf32> to vector<2x128xf32>
    %cst_18 = arith.constant dense<0.000000e+00> : vector<2x128xf32>
    %87 = tpu.matmul %66, %8, %cst_18 {dimension_numbers = #tpu.dot_dimension_numbers<[1], [0], [0], [1], [0, 0, 1, 1], [], []>} : vector<2x32xf32>, vector<32x128xf32>, vector<2x128xf32> -> vector<2x128xf32>
    %88 = arith.addf %86, %87 : vector<2x128xf32>
    %89 = arith.negf %88 : vector<2x128xf32>
    %90 = math.exp %89 : vector<2x128xf32>
    %cst_19 = arith.constant 1.000000e+00 : f32
    %91 = vector.broadcast %cst_19 : f32 to vector<2x128xf32>
    %92 = arith.addf %91, %90 : vector<2x128xf32>
    %93 = arith.divf %91, %92 : vector<2x128xf32>
    %94 = math.tanh %88 : vector<2x128xf32>
    %95 = vector.extract_strided_slice %93 {offsets = [0, 0], sizes = [2, 32], strides = [1, 1]} : vector<2x128xf32> to vector<2x32xf32>
    %96 = vector.extract_strided_slice %93 {offsets = [0, 32], sizes = [2, 32], strides = [1, 1]} : vector<2x128xf32> to vector<2x32xf32>
    %97 = vector.extract_strided_slice %93 {offsets = [0, 64], sizes = [2, 32], strides = [1, 1]} : vector<2x128xf32> to vector<2x32xf32>
    %98 = vector.extract_strided_slice %94 {offsets = [0, 96], sizes = [2, 32], strides = [1, 1]} : vector<2x128xf32> to vector<2x32xf32>
    %99 = arith.mulf %95, %64 : vector<2x32xf32>
    %100 = arith.mulf %96, %98 : vector<2x32xf32>
    %101 = arith.addf %99, %100 : vector<2x32xf32>
    %102 = math.tanh %101 : vector<2x32xf32>
    %103 = arith.mulf %97, %102 : vector<2x32xf32>
    %104 = tpu.concatenate %103, %85 in 1 : vector<2x32xf32>, vector<2x32xf32> -> vector<2x64xf32>
    %cst_20 = arith.constant dense<0.000000e+00> : vector<2x128xf32>
    %105 = tpu.matmul %104, %9, %cst_20 {dimension_numbers = #tpu.dot_dimension_numbers<[1], [0], [0], [1], [0, 0, 1, 1], [], []>} : vector<2x64xf32>, vector<64x128xf32>, vector<2x128xf32> -> vector<2x128xf32>
    %106 = vector.broadcast %10 : vector<1x128xf32> to vector<2x128xf32>
    %107 = arith.addf %105, %106 : vector<2x128xf32>
    %108 = arith.negf %107 : vector<2x128xf32>
    %109 = math.exp %108 : vector<2x128xf32>
    %cst_21 = arith.constant 1.000000e+00 : f32
    %110 = vector.broadcast %cst_21 : f32 to vector<2x128xf32>
    %111 = arith.addf %110, %109 : vector<2x128xf32>
    %112 = arith.divf %110, %111 : vector<2x128xf32>
    %113 = math.tanh %107 : vector<2x128xf32>
    %114 = vector.extract_strided_slice %112 {offsets = [0, 0], sizes = [2, 32], strides = [1, 1]} : vector<2x128xf32> to vector<2x32xf32>
    %115 = vector.extract_strided_slice %112 {offsets = [0, 32], sizes = [2, 32], strides = [1, 1]} : vector<2x128xf32> to vector<2x32xf32>
    %116 = vector.extract_strided_slice %112 {offsets = [0, 64], sizes = [2, 32], strides = [1, 1]} : vector<2x128xf32> to vector<2x32xf32>
    %117 = vector.extract_strided_slice %113 {offsets = [0, 96], sizes = [2, 32], strides = [1, 1]} : vector<2x128xf32> to vector<2x32xf32>
    %118 = arith.mulf %114, %83 : vector<2x32xf32>
    %119 = arith.mulf %115, %117 : vector<2x32xf32>
    %120 = arith.addf %118, %119 : vector<2x32xf32>
    %121 = math.tanh %120 : vector<2x32xf32>
    %122 = arith.mulf %116, %121 : vector<2x32xf32>
    %123 = vector.extract_strided_slice %7 {offsets = [6, 0], sizes = [2, 128], strides = [1, 1]} : vector<16x128xf32> to vector<2x128xf32>
    %cst_22 = arith.constant dense<0.000000e+00> : vector<2x128xf32>
    %124 = tpu.matmul %103, %8, %cst_22 {dimension_numbers = #tpu.dot_dimension_numbers<[1], [0], [0], [1], [0, 0, 1, 1], [], []>} : vector<2x32xf32>, vector<32x128xf32>, vector<2x128xf32> -> vector<2x128xf32>
    %125 = arith.addf %123, %124 : vector<2x128xf32>
    %126 = arith.negf %125 : vector<2x128xf32>
    %127 = math.exp %126 : vector<2x128xf32>
    %cst_23 = arith.constant 1.000000e+00 : f32
    %128 = vector.broadcast %cst_23 : f32 to vector<2x128xf32>
    %129 = arith.addf %128, %127 : vector<2x128xf32>
    %130 = arith.divf %128, %129 : vector<2x128xf32>
    %131 = math.tanh %125 : vector<2x128xf32>
    %132 = vector.extract_strided_slice %130 {offsets = [0, 0], sizes = [2, 32], strides = [1, 1]} : vector<2x128xf32> to vector<2x32xf32>
    %133 = vector.extract_strided_slice %130 {offsets = [0, 32], sizes = [2, 32], strides = [1, 1]} : vector<2x128xf32> to vector<2x32xf32>
    %134 = vector.extract_strided_slice %130 {offsets = [0, 64], sizes = [2, 32], strides = [1, 1]} : vector<2x128xf32> to vector<2x32xf32>
    %135 = vector.extract_strided_slice %131 {offsets = [0, 96], sizes = [2, 32], strides = [1, 1]} : vector<2x128xf32> to vector<2x32xf32>
    %136 = arith.mulf %132, %101 : vector<2x32xf32>
    %137 = arith.mulf %133, %135 : vector<2x32xf32>
    %138 = arith.addf %136, %137 : vector<2x32xf32>
    %139 = math.tanh %138 : vector<2x32xf32>
    %140 = arith.mulf %134, %139 : vector<2x32xf32>
    %141 = tpu.concatenate %140, %122 in 1 : vector<2x32xf32>, vector<2x32xf32> -> vector<2x64xf32>
    %cst_24 = arith.constant dense<0.000000e+00> : vector<2x128xf32>
    %142 = tpu.matmul %141, %9, %cst_24 {dimension_numbers = #tpu.dot_dimension_numbers<[1], [0], [0], [1], [0, 0, 1, 1], [], []>} : vector<2x64xf32>, vector<64x128xf32>, vector<2x128xf32> -> vector<2x128xf32>
    %143 = vector.broadcast %10 : vector<1x128xf32> to vector<2x128xf32>
    %144 = arith.addf %142, %143 : vector<2x128xf32>
    %145 = arith.negf %144 : vector<2x128xf32>
    %146 = math.exp %145 : vector<2x128xf32>
    %cst_25 = arith.constant 1.000000e+00 : f32
    %147 = vector.broadcast %cst_25 : f32 to vector<2x128xf32>
    %148 = arith.addf %147, %146 : vector<2x128xf32>
    %149 = arith.divf %147, %148 : vector<2x128xf32>
    %150 = math.tanh %144 : vector<2x128xf32>
    %151 = vector.extract_strided_slice %149 {offsets = [0, 0], sizes = [2, 32], strides = [1, 1]} : vector<2x128xf32> to vector<2x32xf32>
    %152 = vector.extract_strided_slice %149 {offsets = [0, 32], sizes = [2, 32], strides = [1, 1]} : vector<2x128xf32> to vector<2x32xf32>
    %153 = vector.extract_strided_slice %149 {offsets = [0, 64], sizes = [2, 32], strides = [1, 1]} : vector<2x128xf32> to vector<2x32xf32>
    %154 = vector.extract_strided_slice %150 {offsets = [0, 96], sizes = [2, 32], strides = [1, 1]} : vector<2x128xf32> to vector<2x32xf32>
    %155 = arith.mulf %151, %120 : vector<2x32xf32>
    %156 = arith.mulf %152, %154 : vector<2x32xf32>
    %157 = arith.addf %155, %156 : vector<2x32xf32>
    %158 = math.tanh %157 : vector<2x32xf32>
    %159 = arith.mulf %153, %158 : vector<2x32xf32>
    %160 = vector.extract_strided_slice %7 {offsets = [8, 0], sizes = [2, 128], strides = [1, 1]} : vector<16x128xf32> to vector<2x128xf32>
    %cst_26 = arith.constant dense<0.000000e+00> : vector<2x128xf32>
    %161 = tpu.matmul %140, %8, %cst_26 {dimension_numbers = #tpu.dot_dimension_numbers<[1], [0], [0], [1], [0, 0, 1, 1], [], []>} : vector<2x32xf32>, vector<32x128xf32>, vector<2x128xf32> -> vector<2x128xf32>
    %162 = arith.addf %160, %161 : vector<2x128xf32>
    %163 = arith.negf %162 : vector<2x128xf32>
    %164 = math.exp %163 : vector<2x128xf32>
    %cst_27 = arith.constant 1.000000e+00 : f32
    %165 = vector.broadcast %cst_27 : f32 to vector<2x128xf32>
    %166 = arith.addf %165, %164 : vector<2x128xf32>
    %167 = arith.divf %165, %166 : vector<2x128xf32>
    %168 = math.tanh %162 : vector<2x128xf32>
    %169 = vector.extract_strided_slice %167 {offsets = [0, 0], sizes = [2, 32], strides = [1, 1]} : vector<2x128xf32> to vector<2x32xf32>
    %170 = vector.extract_strided_slice %167 {offsets = [0, 32], sizes = [2, 32], strides = [1, 1]} : vector<2x128xf32> to vector<2x32xf32>
    %171 = vector.extract_strided_slice %167 {offsets = [0, 64], sizes = [2, 32], strides = [1, 1]} : vector<2x128xf32> to vector<2x32xf32>
    %172 = vector.extract_strided_slice %168 {offsets = [0, 96], sizes = [2, 32], strides = [1, 1]} : vector<2x128xf32> to vector<2x32xf32>
    %173 = arith.mulf %169, %138 : vector<2x32xf32>
    %174 = arith.mulf %170, %172 : vector<2x32xf32>
    %175 = arith.addf %173, %174 : vector<2x32xf32>
    %176 = math.tanh %175 : vector<2x32xf32>
    %177 = arith.mulf %171, %176 : vector<2x32xf32>
    %178 = tpu.concatenate %177, %159 in 1 : vector<2x32xf32>, vector<2x32xf32> -> vector<2x64xf32>
    %cst_28 = arith.constant dense<0.000000e+00> : vector<2x128xf32>
    %179 = tpu.matmul %178, %9, %cst_28 {dimension_numbers = #tpu.dot_dimension_numbers<[1], [0], [0], [1], [0, 0, 1, 1], [], []>} : vector<2x64xf32>, vector<64x128xf32>, vector<2x128xf32> -> vector<2x128xf32>
    %180 = vector.broadcast %10 : vector<1x128xf32> to vector<2x128xf32>
    %181 = arith.addf %179, %180 : vector<2x128xf32>
    %182 = arith.negf %181 : vector<2x128xf32>
    %183 = math.exp %182 : vector<2x128xf32>
    %cst_29 = arith.constant 1.000000e+00 : f32
    %184 = vector.broadcast %cst_29 : f32 to vector<2x128xf32>
    %185 = arith.addf %184, %183 : vector<2x128xf32>
    %186 = arith.divf %184, %185 : vector<2x128xf32>
    %187 = math.tanh %181 : vector<2x128xf32>
    %188 = vector.extract_strided_slice %186 {offsets = [0, 0], sizes = [2, 32], strides = [1, 1]} : vector<2x128xf32> to vector<2x32xf32>
    %189 = vector.extract_strided_slice %186 {offsets = [0, 32], sizes = [2, 32], strides = [1, 1]} : vector<2x128xf32> to vector<2x32xf32>
    %190 = vector.extract_strided_slice %186 {offsets = [0, 64], sizes = [2, 32], strides = [1, 1]} : vector<2x128xf32> to vector<2x32xf32>
    %191 = vector.extract_strided_slice %187 {offsets = [0, 96], sizes = [2, 32], strides = [1, 1]} : vector<2x128xf32> to vector<2x32xf32>
    %192 = arith.mulf %188, %157 : vector<2x32xf32>
    %193 = arith.mulf %189, %191 : vector<2x32xf32>
    %194 = arith.addf %192, %193 : vector<2x32xf32>
    %195 = math.tanh %194 : vector<2x32xf32>
    %196 = arith.mulf %190, %195 : vector<2x32xf32>
    %197 = vector.extract_strided_slice %7 {offsets = [10, 0], sizes = [2, 128], strides = [1, 1]} : vector<16x128xf32> to vector<2x128xf32>
    %cst_30 = arith.constant dense<0.000000e+00> : vector<2x128xf32>
    %198 = tpu.matmul %177, %8, %cst_30 {dimension_numbers = #tpu.dot_dimension_numbers<[1], [0], [0], [1], [0, 0, 1, 1], [], []>} : vector<2x32xf32>, vector<32x128xf32>, vector<2x128xf32> -> vector<2x128xf32>
    %199 = arith.addf %197, %198 : vector<2x128xf32>
    %200 = arith.negf %199 : vector<2x128xf32>
    %201 = math.exp %200 : vector<2x128xf32>
    %cst_31 = arith.constant 1.000000e+00 : f32
    %202 = vector.broadcast %cst_31 : f32 to vector<2x128xf32>
    %203 = arith.addf %202, %201 : vector<2x128xf32>
    %204 = arith.divf %202, %203 : vector<2x128xf32>
    %205 = math.tanh %199 : vector<2x128xf32>
    %206 = vector.extract_strided_slice %204 {offsets = [0, 0], sizes = [2, 32], strides = [1, 1]} : vector<2x128xf32> to vector<2x32xf32>
    %207 = vector.extract_strided_slice %204 {offsets = [0, 32], sizes = [2, 32], strides = [1, 1]} : vector<2x128xf32> to vector<2x32xf32>
    %208 = vector.extract_strided_slice %204 {offsets = [0, 64], sizes = [2, 32], strides = [1, 1]} : vector<2x128xf32> to vector<2x32xf32>
    %209 = vector.extract_strided_slice %205 {offsets = [0, 96], sizes = [2, 32], strides = [1, 1]} : vector<2x128xf32> to vector<2x32xf32>
    %210 = arith.mulf %206, %175 : vector<2x32xf32>
    %211 = arith.mulf %207, %209 : vector<2x32xf32>
    %212 = arith.addf %210, %211 : vector<2x32xf32>
    %213 = math.tanh %212 : vector<2x32xf32>
    %214 = arith.mulf %208, %213 : vector<2x32xf32>
    %215 = tpu.concatenate %214, %196 in 1 : vector<2x32xf32>, vector<2x32xf32> -> vector<2x64xf32>
    %cst_32 = arith.constant dense<0.000000e+00> : vector<2x128xf32>
    %216 = tpu.matmul %215, %9, %cst_32 {dimension_numbers = #tpu.dot_dimension_numbers<[1], [0], [0], [1], [0, 0, 1, 1], [], []>} : vector<2x64xf32>, vector<64x128xf32>, vector<2x128xf32> -> vector<2x128xf32>
    %217 = vector.broadcast %10 : vector<1x128xf32> to vector<2x128xf32>
    %218 = arith.addf %216, %217 : vector<2x128xf32>
    %219 = arith.negf %218 : vector<2x128xf32>
    %220 = math.exp %219 : vector<2x128xf32>
    %cst_33 = arith.constant 1.000000e+00 : f32
    %221 = vector.broadcast %cst_33 : f32 to vector<2x128xf32>
    %222 = arith.addf %221, %220 : vector<2x128xf32>
    %223 = arith.divf %221, %222 : vector<2x128xf32>
    %224 = math.tanh %218 : vector<2x128xf32>
    %225 = vector.extract_strided_slice %223 {offsets = [0, 0], sizes = [2, 32], strides = [1, 1]} : vector<2x128xf32> to vector<2x32xf32>
    %226 = vector.extract_strided_slice %223 {offsets = [0, 32], sizes = [2, 32], strides = [1, 1]} : vector<2x128xf32> to vector<2x32xf32>
    %227 = vector.extract_strided_slice %223 {offsets = [0, 64], sizes = [2, 32], strides = [1, 1]} : vector<2x128xf32> to vector<2x32xf32>
    %228 = vector.extract_strided_slice %224 {offsets = [0, 96], sizes = [2, 32], strides = [1, 1]} : vector<2x128xf32> to vector<2x32xf32>
    %229 = arith.mulf %225, %194 : vector<2x32xf32>
    %230 = arith.mulf %226, %228 : vector<2x32xf32>
    %231 = arith.addf %229, %230 : vector<2x32xf32>
    %232 = math.tanh %231 : vector<2x32xf32>
    %233 = arith.mulf %227, %232 : vector<2x32xf32>
    %234 = vector.extract_strided_slice %7 {offsets = [12, 0], sizes = [2, 128], strides = [1, 1]} : vector<16x128xf32> to vector<2x128xf32>
    %cst_34 = arith.constant dense<0.000000e+00> : vector<2x128xf32>
    %235 = tpu.matmul %214, %8, %cst_34 {dimension_numbers = #tpu.dot_dimension_numbers<[1], [0], [0], [1], [0, 0, 1, 1], [], []>} : vector<2x32xf32>, vector<32x128xf32>, vector<2x128xf32> -> vector<2x128xf32>
    %236 = arith.addf %234, %235 : vector<2x128xf32>
    %237 = arith.negf %236 : vector<2x128xf32>
    %238 = math.exp %237 : vector<2x128xf32>
    %cst_35 = arith.constant 1.000000e+00 : f32
    %239 = vector.broadcast %cst_35 : f32 to vector<2x128xf32>
    %240 = arith.addf %239, %238 : vector<2x128xf32>
    %241 = arith.divf %239, %240 : vector<2x128xf32>
    %242 = math.tanh %236 : vector<2x128xf32>
    %243 = vector.extract_strided_slice %241 {offsets = [0, 0], sizes = [2, 32], strides = [1, 1]} : vector<2x128xf32> to vector<2x32xf32>
    %244 = vector.extract_strided_slice %241 {offsets = [0, 32], sizes = [2, 32], strides = [1, 1]} : vector<2x128xf32> to vector<2x32xf32>
    %245 = vector.extract_strided_slice %241 {offsets = [0, 64], sizes = [2, 32], strides = [1, 1]} : vector<2x128xf32> to vector<2x32xf32>
    %246 = vector.extract_strided_slice %242 {offsets = [0, 96], sizes = [2, 32], strides = [1, 1]} : vector<2x128xf32> to vector<2x32xf32>
    %247 = arith.mulf %243, %212 : vector<2x32xf32>
    %248 = arith.mulf %244, %246 : vector<2x32xf32>
    %249 = arith.addf %247, %248 : vector<2x32xf32>
    %250 = math.tanh %249 : vector<2x32xf32>
    %251 = arith.mulf %245, %250 : vector<2x32xf32>
    %252 = tpu.concatenate %251, %233 in 1 : vector<2x32xf32>, vector<2x32xf32> -> vector<2x64xf32>
    %cst_36 = arith.constant dense<0.000000e+00> : vector<2x128xf32>
    %253 = tpu.matmul %252, %9, %cst_36 {dimension_numbers = #tpu.dot_dimension_numbers<[1], [0], [0], [1], [0, 0, 1, 1], [], []>} : vector<2x64xf32>, vector<64x128xf32>, vector<2x128xf32> -> vector<2x128xf32>
    %254 = vector.broadcast %10 : vector<1x128xf32> to vector<2x128xf32>
    %255 = arith.addf %253, %254 : vector<2x128xf32>
    %256 = arith.negf %255 : vector<2x128xf32>
    %257 = math.exp %256 : vector<2x128xf32>
    %cst_37 = arith.constant 1.000000e+00 : f32
    %258 = vector.broadcast %cst_37 : f32 to vector<2x128xf32>
    %259 = arith.addf %258, %257 : vector<2x128xf32>
    %260 = arith.divf %258, %259 : vector<2x128xf32>
    %261 = math.tanh %255 : vector<2x128xf32>
    %262 = vector.extract_strided_slice %260 {offsets = [0, 0], sizes = [2, 32], strides = [1, 1]} : vector<2x128xf32> to vector<2x32xf32>
    %263 = vector.extract_strided_slice %260 {offsets = [0, 32], sizes = [2, 32], strides = [1, 1]} : vector<2x128xf32> to vector<2x32xf32>
    %264 = vector.extract_strided_slice %260 {offsets = [0, 64], sizes = [2, 32], strides = [1, 1]} : vector<2x128xf32> to vector<2x32xf32>
    %265 = vector.extract_strided_slice %261 {offsets = [0, 96], sizes = [2, 32], strides = [1, 1]} : vector<2x128xf32> to vector<2x32xf32>
    %266 = arith.mulf %262, %231 : vector<2x32xf32>
    %267 = arith.mulf %263, %265 : vector<2x32xf32>
    %268 = arith.addf %266, %267 : vector<2x32xf32>
    %269 = math.tanh %268 : vector<2x32xf32>
    %270 = arith.mulf %264, %269 : vector<2x32xf32>
    %271 = vector.extract_strided_slice %7 {offsets = [14, 0], sizes = [2, 128], strides = [1, 1]} : vector<16x128xf32> to vector<2x128xf32>
    %cst_38 = arith.constant dense<0.000000e+00> : vector<2x128xf32>
    %272 = tpu.matmul %251, %8, %cst_38 {dimension_numbers = #tpu.dot_dimension_numbers<[1], [0], [0], [1], [0, 0, 1, 1], [], []>} : vector<2x32xf32>, vector<32x128xf32>, vector<2x128xf32> -> vector<2x128xf32>
    %273 = arith.addf %271, %272 : vector<2x128xf32>
    %274 = arith.negf %273 : vector<2x128xf32>
    %275 = math.exp %274 : vector<2x128xf32>
    %cst_39 = arith.constant 1.000000e+00 : f32
    %276 = vector.broadcast %cst_39 : f32 to vector<2x128xf32>
    %277 = arith.addf %276, %275 : vector<2x128xf32>
    %278 = arith.divf %276, %277 : vector<2x128xf32>
    %279 = math.tanh %273 : vector<2x128xf32>
    %280 = vector.extract_strided_slice %278 {offsets = [0, 0], sizes = [2, 32], strides = [1, 1]} : vector<2x128xf32> to vector<2x32xf32>
    %281 = vector.extract_strided_slice %278 {offsets = [0, 32], sizes = [2, 32], strides = [1, 1]} : vector<2x128xf32> to vector<2x32xf32>
    %282 = vector.extract_strided_slice %278 {offsets = [0, 64], sizes = [2, 32], strides = [1, 1]} : vector<2x128xf32> to vector<2x32xf32>
    %283 = vector.extract_strided_slice %279 {offsets = [0, 96], sizes = [2, 32], strides = [1, 1]} : vector<2x128xf32> to vector<2x32xf32>
    %284 = arith.mulf %280, %249 : vector<2x32xf32>
    %285 = arith.mulf %281, %283 : vector<2x32xf32>
    %286 = arith.addf %284, %285 : vector<2x32xf32>
    %287 = math.tanh %286 : vector<2x32xf32>
    %288 = arith.mulf %282, %287 : vector<2x32xf32>
    %289 = tpu.concatenate %288, %270 in 1 : vector<2x32xf32>, vector<2x32xf32> -> vector<2x64xf32>
    %cst_40 = arith.constant dense<0.000000e+00> : vector<2x128xf32>
    %290 = tpu.matmul %289, %9, %cst_40 {dimension_numbers = #tpu.dot_dimension_numbers<[1], [0], [0], [1], [0, 0, 1, 1], [], []>} : vector<2x64xf32>, vector<64x128xf32>, vector<2x128xf32> -> vector<2x128xf32>
    %291 = vector.broadcast %10 : vector<1x128xf32> to vector<2x128xf32>
    %292 = arith.addf %290, %291 : vector<2x128xf32>
    %293 = arith.negf %292 : vector<2x128xf32>
    %294 = math.exp %293 : vector<2x128xf32>
    %cst_41 = arith.constant 1.000000e+00 : f32
    %295 = vector.broadcast %cst_41 : f32 to vector<2x128xf32>
    %296 = arith.addf %295, %294 : vector<2x128xf32>
    %297 = arith.divf %295, %296 : vector<2x128xf32>
    %298 = math.tanh %292 : vector<2x128xf32>
    %299 = vector.extract_strided_slice %297 {offsets = [0, 0], sizes = [2, 32], strides = [1, 1]} : vector<2x128xf32> to vector<2x32xf32>
    %300 = vector.extract_strided_slice %297 {offsets = [0, 32], sizes = [2, 32], strides = [1, 1]} : vector<2x128xf32> to vector<2x32xf32>
    %301 = vector.extract_strided_slice %297 {offsets = [0, 64], sizes = [2, 32], strides = [1, 1]} : vector<2x128xf32> to vector<2x32xf32>
    %302 = vector.extract_strided_slice %298 {offsets = [0, 96], sizes = [2, 32], strides = [1, 1]} : vector<2x128xf32> to vector<2x32xf32>
    %303 = arith.mulf %299, %268 : vector<2x32xf32>
    %304 = arith.mulf %300, %302 : vector<2x32xf32>
    %305 = arith.addf %303, %304 : vector<2x32xf32>
    %306 = math.tanh %305 : vector<2x32xf32>
    %307 = arith.mulf %301, %306 : vector<2x32xf32>
    %c0_42 = arith.constant 0 : index
    %c0_43 = arith.constant 0 : index
    %308 = vector.load %arg5[%c0_42, %c0_43] : memref<32x16xf32, #tpu.memory_space<vmem>>, vector<32x16xf32>
    %cst_44 = arith.constant dense<0.000000e+00> : vector<2x16xf32>
    %309 = tpu.matmul %307, %308, %cst_44 {dimension_numbers = #tpu.dot_dimension_numbers<[1], [0], [0], [1], [0, 0, 1, 1], [], []>} : vector<2x32xf32>, vector<32x16xf32>, vector<2x16xf32> -> vector<2x16xf32>
    %c0_45 = arith.constant 0 : index
    %c0_46 = arith.constant 0 : index
    %310 = vector.load %arg6[%c0_45, %c0_46] : memref<1x16xf32, #tpu.memory_space<vmem>>, vector<1x16xf32>
    %311 = vector.broadcast %310 : vector<1x16xf32> to vector<2x16xf32>
    %312 = arith.addf %309, %311 : vector<2x16xf32>
    %c0_47 = arith.constant 0 : index
    %c0_48 = arith.constant 0 : index
    %313 = vector.load %arg7[%c0_47, %c0_48] : memref<2x16xf32, #tpu.memory_space<vmem>>, vector<2x16xf32>
    tpu.vector_store %arg7[%c0_47, %c0_48], %312 {strides = array<i32>} : memref<2x16xf32, #tpu.memory_space<vmem>>, vector<2x16xf32>,
    return
  }
}

</mosaic_0001>

<bundles_post_ra>
// kernel: my_module_double_lstm.1
= control target key start
LH: loop header
LB: loop body
LE: loop exit
PB: predicated region body
PF: predicated region fallthrough
CT: control target
= control target key end

     0   :  { %v1439_v3 = vmov 0   ;;  %s1854_s0 = inlined_call_operand.vmem [shape: s32[16,1], index: 0, kind: input, shape index: {}]   ;;  %s1855_s1 = inlined_call_operand.vmem [shape: f32[16,128], index: 1, kind: input, shape index: {}]   ;;  %s1856_s2 = inlined_call_operand.vmem [shape: f32[32,128], index: 2, kind: input, shape index: {}]   ;;  %s1857_s3 = inlined_call_operand.vmem [shape: f32[64,128], index: 3, kind: input, shape index: {}]   ;;  %s1858_s4 = inlined_call_operand.vmem [shape: f32[1,128], index: 4, kind: input, shape index: {}]   ;;  %s1859_s5 = inlined_call_operand.vmem [shape: f32[32,16], index: 5, kind: input, shape index: {}]   ;;  %s1860_s6 = inlined_call_operand.vmem [shape: f32[1,16], index: 6, kind: input, shape index: {}]   ;;  %s1861_s7 = inlined_call_operand.hbm [shape: f32[2,16], index: 7, kind: output, shape index: {}]  }
   0x1   :  { %v27_v0 = vld [vmem:[%s1854_s0] sm:$0xff]  ;;  %v1490_v1 = vld [vmem:[%s1856_s2 + $0x18] sm:$0xff]  ;;  %v1495_v2 = vld [vmem:[%s1856_s2 + $0x10] sm:$0xff]  ;;  %1280 = vset.pattern.permute.xlu0 %v1439_v3 }
   0x2   :  { %104 = vmatpush.msra.mxu1 %v1490_v1  ;;  %v44_v4 = vld [vmem:[%s1855_s1 + $0x8] sm:$0xff]  ;;  %32 = vperm.xlu0 %1280, %v27_v0  }
   0x3   :  { %66 = vmatpush.msra.mxu0 %v44_v4  ;;  %v1504_v5 = vld [vmem:[%s1856_s2 + $0x8] sm:$0xff] }
   0x4   :  { %12 = vsyncpa [#allocation3], 0  ;;  %105 = vmatpush.msra.mxu1 %v1495_v2  ;;  %233 = vmatpush.msra.mxu3 %v1490_v1  ;;  %v43_v6 = vld [vmem:[%s1855_s1] sm:$0xff]  ;;  %v1440_v8 = vmov 0.0   ;;  %v29_v9 = vlaneseq  ;;  %vm45_vm0 = vcmask 130048   ;;  %s1441_s1 = smov 64  }
   0x5   :  { %1281 = vset.pattern.permute.xlu2 %v1439_v3  ;;  %v1517_v7 = vld [vmem:[%s1856_s2] sm:$0xff]  ;;  %67 = vmatpush.msra.mxu0 %v43_v6  ;;  %s1442_s2 = smov 96   ;;  %v1547_v36 = vld [vmem:[%s1857_s3 + $0x38] sm:$0xff]  ;;  %v1552_v37 = vld [vmem:[%s1857_s3 + $0x30] sm:$0xff]  ;;  %vm88_vm6 = vcmask 261120   ;;  %vm158_vm7 = vcmask 523264  }
   0x6   :  { %106 = vmatpush.msra.mxu1 %v1504_v5  ;;  %234 = vmatpush.msra.mxu3 %v1495_v2  ;;  %v1530_v10 = vand.u32 127, %v29_v9  ;;  %v1559_v38 = vld [vmem:[%s1857_s3 + $0x28] sm:$0xff]  ;;  %v1567_v39 = vld [vmem:[%s1857_s3 + $0x20] sm:$0xff]  ;;  %v1575_v40 = vld [vmem:[%s1857_s3 + $0x18] sm:$0xff]  ;;  %s1443_s20 = smov [#allocation2]   ;;  %s1230_s24 = sshll.u32 %s1861_s7, 4  ;;  %s1231_s24 = int_to_ptr.hbm [resolvable:$true] %s1230_s24 }
   0x7   :  { %170 = vmatpush.msra.mxu2 %v1547_v36  ;;  %307 = vmatpush.msrb.mxu0 %v1547_v36  ;;  %v1583_v41 = vld [vmem:[%s1857_s3 + $0x10] sm:$0xff]  ;;  %v1591_v42 = vld [vmem:[%s1857_s3 + $0x8] sm:$0xff]  ;;  %v1604_v45 = vld [vmem:[%s1857_s3] sm:$0xff]  ;;  %s1228_s21 = sshll.u32 %s1443_s20, 4  ;;  %s1229_s21 = int_to_ptr.vmem [resolvable:$true] %s1228_s21 }
   0x8   :  { %235 = vmatpush.msra.mxu3 %v1504_v5  ;;  %107 = vmatpush.msra.mxu1 %v1517_v7  ;;  %v1635_v48 = vld [vmem:[%s1858_s4] ss:$0 sm:$0xff] }
   0x9   :  { %108 = vmatmul.f32.vlgmr.msra.gmra.mxu1 %v1440_v8  ;;  %171 = vmatpush.msra.mxu2 %v1552_v37 }
   0xa   :  { %236 = vmatpush.msra.mxu3 %v1517_v7  ;;  %373 = vmatpush.msrb.mxu1 %v1490_v1 }
   0xb   :  { %308 = vmatpush.msrb.mxu0 %v1552_v37  ;;  %172 = vmatpush.msra.mxu2 %v1559_v38 }
   0xc   :  { %374 = vmatpush.msrb.mxu1 %v1495_v2  ;;  %447 = vmatpush.msrb.mxu3 %v1547_v36 }
   0xd   :  { %309 = vmatpush.msrb.mxu0 %v1559_v38  ;;  %173 = vmatpush.msra.mxu2 %v1567_v39 }
   0xe   :  { %375 = vmatpush.msrb.mxu1 %v1504_v5  ;;  %448 = vmatpush.msrb.mxu3 %v1552_v37 }
   0xf   :  { %310 = vmatpush.msrb.mxu0 %v1567_v39  ;;  %174 = vmatpush.msra.mxu2 %v1575_v40 }
  0x10   :  { %376 = vmatpush.msrb.mxu1 %v1517_v7  ;;  %449 = vmatpush.msrb.mxu3 %v1559_v38 }
  0x11   :  { %311 = vmatpush.msrb.mxu0 %v1575_v40  ;;  %175 = vmatpush.msra.mxu2 %v1583_v41 }
  0x12   :  { %513 = vmatpush.msra.mxu1 %v1490_v1  ;;  %450 = vmatpush.msrb.mxu3 %v1567_v39 }
  0x13   :  { %312 = vmatpush.msrb.mxu0 %v1583_v41  ;;  %176 = vmatpush.msra.mxu2 %v1591_v42 }
  0x14   :  { %514 = vmatpush.msra.mxu1 %v1495_v2  ;;  %451 = vmatpush.msrb.mxu3 %v1575_v40 }
  0x15   :  { %313 = vmatpush.msrb.mxu0 %v1591_v42  ;;  %177 = vmatpush.msra.mxu2 %v1604_v45 }
  0x16   :  { %515 = vmatpush.msra.mxu1 %v1504_v5  ;;  %452 = vmatpush.msrb.mxu3 %v1583_v41 }
  0x17   :  { %314 = vmatpush.msrb.mxu0 %v1604_v45  ;;  %587 = vmatpush.msrb.mxu2 %v1547_v36 }
  0x18   :  { %516 = vmatpush.msra.mxu1 %v1517_v7  ;;  %453 = vmatpush.msrb.mxu3 %v1591_v42 }
  0x19   :  { %588 = vmatpush.msrb.mxu2 %v1552_v37 }
  0x1a   :  { %454 = vmatpush.msrb.mxu3 %v1604_v45 }
  0x1b   :  { %589 = vmatpush.msrb.mxu2 %v1559_v38 }
  0x1d   :  { %590 = vmatpush.msrb.mxu2 %v1567_v39 }
  0x1f   :  { %591 = vmatpush.msrb.mxu2 %v1575_v40 }
  0x21   :  { %592 = vmatpush.msrb.mxu2 %v1583_v41 }
  0x23   :  { %593 = vmatpush.msrb.mxu2 %v1591_v42 }
  0x25   :  { %594 = vmatpush.msrb.mxu2 %v1604_v45 }
  0x74   :  { %v33_v11 = vpop.permute.xlu0 %32 }
  0x75   :  { %vm37_vm1 = vcmp.eq.s32.totalorder %v1530_v10, %v33_v11 }
  0x76   :  { %v1239_v12 = vsel %vm37_vm1, 1.0, %v1440_v8 }
  0x77   :  { %1241 = vmatmul.msk.f32.vlgmr.msra.gmra.mxu0 %vm45_vm0, %v1239_v12 }
  0x78   :  { %653 = vmatpush.msra.mxu0 %v1490_v1 }
  0x7a   :  { %654 = vmatpush.msra.mxu0 %v1495_v2 }
  0x7c   :  { %655 = vmatpush.msra.mxu0 %v1504_v5 }
  0x7e   :  { %656 = vmatpush.msra.mxu0 %v1517_v7 }
  0x86   :  { %v109_v13 = vpop.f32.mrf.mxu1 }
  0xf4   :  { %v1535_v14 = vpop.f32.mrf.mxu0 }
  0xf5   :  { %v112_v15 = vadd.f32 %v109_v13, %v1535_v14 }
  0xf7   :  { %1284 = vtanh.f32 %v112_v15  ;;  %v1243_v17 = vmul.f32 -1.442695, %v112_v15 }
  0xf9   :  { %1286 = vpow2.f32 %v1243_v17 }
  0xfd   :  { %v1285_v16 = vpop.eup %1284 }
  0xfe   :  { %135 = vrot.lane.b32.xlu0 %v1285_v16, %s1441_s1 }
  0xff   :  { %v1287_v18 = vpop.eup %1286 }
 0x100   :  { %v116_v19 = vadd.f32 1.0, %v1287_v18 }
 0x102   :  { %1288 = vrcp.f32 %v116_v19  ;;  %v128_v25 = vand.u32 2147483648, %v116_v19  ;;  %vm122_vm3 = vweird.f32 %v116_v19  ;;  %v126_v26 = vand.u32 2147483647, %v116_v19 }
 0x104   :  { %v129_v28 = vor.u32 1.1754944e-38, %v128_v25  ;;  %vm127_vm5 = vcmp.eq.f32.partialorder %v126_v26, 8.507059e+37 }
 0x108   :  { %v1289_v20 = vpop.eup %1288 }
 0x109   :  { %v118_v21 = vmul.f32 %v1289_v20, %v116_v19  ;;  %vm123_vm2 = vweird.f32 %v1289_v20 }
 0x10a   :  { %vm124_vm4 = vmor %vm122_vm3, %vm123_vm2 }
 0x10b   :  { %v119_v22 = vsub.f32 1.0, %v118_v21 }
 0x10d   :  { %v120_v23 = vmul.f32 %v1289_v20, %v119_v22 }
 0x10f   :  { %v121_v24 = vadd.f32 %v1289_v20, %v120_v23 }
 0x111   :  { %v125_v27 = vsel %vm124_vm4, %v1289_v20, %v121_v24 }
 0x112   :  { %v130_v30 = vsel %vm127_vm5, %v129_v28, %v125_v27 }
 0x113   :  { %v133_v32 = vmul.f32 0.0, %v130_v30 }
 0x170   :  { %v136_v29 = vpop.permute.xlu0 %135 }
 0x171   :  { %v138_v31 = vmul.f32 %v136_v29, %v130_v30  ;;  %v28_v29 = vld [vmem:[%s1854_s0 + $0x8] sm:$0xff] }
 0x173   :  { %140 = vrot.lane.b32.xlu1 %v138_v31, %s1442_s2 }
 0x1e5   :  { %v141_v33 = vpop.permute.xlu1 %140 }
 0x1e6   :  { %v1540_v34 = vadd.f32 %v141_v33, %v133_v32 }
 0x1e8   :  { %1290 = vtanh.f32 %v1540_v34 }
 0x1ee   :  { %v1291_v35 = vpop.eup %1290 }
 0x1ef   :  { %146 = vrot.lane.b32.xlu1 %v1291_v35, %s1441_s1 }
 0x261   :  { %v147_v43 = vpop.permute.xlu1 %146 }
 0x262   :  { %v149_v44 = vmul.f32 %v147_v43, %v130_v30  ;;  %v266_v30 = vrot.slane %v1540_v34, 6 }
 0x264   :  { %151 = vrot.lane.b32.xlu2 %v149_v44, %s1441_s1 }
 0x2be   :  { %v152_v46 = vpop.permute.xlu2 %151 }
 0x2bf   :  { %1246 = vmatmul.msk.f32.vlgmr.msra.gmra.mxu3 %vm88_vm6, %v152_v46  ;;  %v154_v47 = vsel %vm88_vm6, %v152_v46, 0.0 }
 0x2c0   :  { %1244 = vmatmul.msk.f32.vlgmr.msra.gmra.mxu2 %vm158_vm7, %v154_v47  ;;  %785 = vmatpush.msra.mxu3 %v1490_v1 }
 0x2c1   :  { %925 = vmatpush.msra.mxu2 %v1490_v1 }
 0x2c2   :  { %786 = vmatpush.msra.mxu3 %v1495_v2 }
 0x2c3   :  { %926 = vmatpush.msra.mxu2 %v1495_v2 }
 0x2c4   :  { %787 = vmatpush.msra.mxu3 %v1504_v5 }
 0x2c5   :  { %927 = vmatpush.msra.mxu2 %v1504_v5 }
 0x2c6   :  { %788 = vmatpush.msra.mxu3 %v1517_v7 }
 0x2c7   :  { %928 = vmatpush.msra.mxu2 %v1517_v7 }
 0x342   :  { %v238_v49 = vpop.f32.mrf.mxu3 }
 0x343   :  { %v242_v50 = vrot.slane %v238_v49, 6  ;;  %v179_v51 = vpop.f32.mrf.mxu2 }
 0x344   :  { %v180_v52 = vadd.f32 %v1635_v48, %v179_v51 }
 0x345   :  { %v244_v53 = vadd.f32 %v242_v50, %v1535_v14 }
 0x346   :  { %1292 = vtanh.f32 %v180_v52  ;;  %v1245_v56 = vmul.f32 -1.442695, %v180_v52 }
 0x347   :  { %1294 = vtanh.f32 %v244_v53  ;;  %v1247_v60 = vmul.f32 -1.442695, %v244_v53 }
 0x348   :  { %1296 = vpow2.f32 %v1245_v56 }
 0x34c   :  { %v1293_v54 = vpop.eup %1292 }
 0x34d   :  { %v1295_v55 = vpop.eup %1294  ;;  %204 = vrot.lane.b32.xlu2 %v1293_v54, %s1441_s1 }
 0x34e   :  { %270 = vrot.lane.b32.xlu0 %v1295_v55, %s1441_s1  ;;  %v1297_v57 = vpop.eup %1296 }
 0x34f   :  { %v185_v58 = vadd.f32 1.0, %v1297_v57 }
 0x351   :  { %1298 = vrcp.f32 %v185_v58  ;;  %v197_v6 = vand.u32 2147483648, %v185_v58  ;;  %vm191_vm9 = vweird.f32 %v185_v58  ;;  %v195_v9 = vand.u32 2147483647, %v185_v58 }
 0x352   :  { %1300 = vpow2.f32 %v1247_v60 }
 0x353   :  { %v198_v12 = vor.u32 1.1754944e-38, %v197_v6  ;;  %vm196_vm11 = vcmp.eq.f32.partialorder %v195_v9, 8.507059e+37 }
 0x357   :  { %v1299_v59 = vpop.eup %1298 }
 0x358   :  { %v187_v61 = vmul.f32 %v1299_v59, %v185_v58  ;;  %v1301_v0 = vpop.eup %1300  ;;  %vm192_vm8 = vweird.f32 %v1299_v59 }
 0x359   :  { %v248_v3 = vadd.f32 1.0, %v1301_v0  ;;  %vm193_vm10 = vmor %vm191_vm9, %vm192_vm8 }
 0x35a   :  { %v188_v62 = vsub.f32 1.0, %v187_v61 }
 0x35b   :  { %1302 = vrcp.f32 %v248_v3  ;;  %v260_v22 = vand.u32 2147483648, %v248_v3  ;;  %vm254_vm13 = vweird.f32 %v248_v3  ;;  %v258_v23 = vand.u32 2147483647, %v248_v3 }
 0x35c   :  { %v189_v63 = vmul.f32 %v1299_v59, %v188_v62 }
 0x35d   :  { %v261_v25 = vor.u32 1.1754944e-38, %v260_v22  ;;  %vm259_vm15 = vcmp.eq.f32.partialorder %v258_v23, 8.507059e+37 }
 0x35e   :  { %v190_v4 = vadd.f32 %v1299_v59, %v189_v63 }
 0x360   :  { %v194_v11 = vsel %vm193_vm10, %v1299_v59, %v190_v4 }
 0x361   :  { %v199_v15 = vsel %vm196_vm11, %v198_v12, %v194_v11  ;;  %v1303_v17 = vpop.eup %1302 }
 0x362   :  { %v250_v18 = vmul.f32 %v1303_v17, %v248_v3  ;;  %vm255_vm12 = vweird.f32 %v1303_v17  ;;  %v202_v31 = vmul.f32 0.0, %v199_v15 }
 0x363   :  { %vm256_vm14 = vmor %vm254_vm13, %vm255_vm12 }
 0x364   :  { %v251_v19 = vsub.f32 1.0, %v250_v18 }
 0x366   :  { %v252_v20 = vmul.f32 %v1303_v17, %v251_v19 }
 0x368   :  { %v253_v21 = vadd.f32 %v1303_v17, %v252_v20 }
 0x36a   :  { %v257_v24 = vsel %vm256_vm14, %v1303_v17, %v253_v21 }
 0x36b   :  { %v262_v27 = vsel %vm259_vm15, %v261_v25, %v257_v24 }
 0x36c   :  { %v268_v33 = vmul.f32 %v266_v30, %v262_v27 }
 0x3a7   :  { %v205_v13 = vpop.permute.xlu2 %204 }
 0x3a8   :  { %v207_v16 = vmul.f32 %v205_v13, %v199_v15 }
 0x3aa   :  { %209 = vrot.lane.b32.xlu1 %v207_v16, %s1442_s2 }
 0x3c0   :  { %v271_v26 = vpop.permute.xlu0 %270 }
 0x3c1   :  { %v273_v28 = vmul.f32 %v271_v26, %v262_v27 }
 0x3c3   :  { %275 = vrot.lane.b32.xlu2 %v273_v28, %s1442_s2 }
 0x3cb   :  { %35 = vperm.xlu2 %1281, %v28_v29  }
 0x41c   :  { %v210_v32 = vpop.permute.xlu1 %209 }
 0x41d   :  { %v1647_v35 = vadd.f32 %v210_v32, %v202_v31  ;;  %v276_v43 = vpop.permute.xlu2 %275 }
 0x41e   :  { %v1649_v44 = vadd.f32 %v276_v43, %v268_v33 }
 0x41f   :  { %1304 = vtanh.f32 %v1647_v35 }
 0x420   :  { %1306 = vtanh.f32 %v1649_v44 }
 0x425   :  { %v1305_v46 = vpop.eup %1304  ;;  %v36_v49 = vpop.permute.xlu2 %35 }
 0x426   :  { %v1307_v47 = vpop.eup %1306  ;;  %215 = vrot.lane.b32.xlu0 %v1305_v46, %s1441_s1  ;;  %vm38_vm1 = vcmp.eq.s32.totalorder %v1530_v10, %v36_v49 }
 0x427   :  { %281 = vrot.lane.b32.xlu1 %v1307_v47, %s1441_s1  ;;  %v1240_v34 = vsel %vm38_vm1, 1.0, %v1440_v8 }
 0x428   :  { %1242 = vmatmul.msk.f32.gmra.mxu0 %vm45_vm0, %v1240_v34 }
 0x498   :  { %v216_v50 = vpop.permute.xlu0 %215 }
 0x499   :  { %v218_v51 = vmul.f32 %v216_v50, %v199_v15  ;;  %v282_v52 = vpop.permute.xlu1 %281 }
 0x49a   :  { %v284_v53 = vmul.f32 %v282_v52, %v262_v27 }
 0x49b   :  { %v290_v54 = vrot.slane %v218_v51, 6  ;;  %v406_v51 = vrot.slane %v1649_v44, 6 }
 0x49c   :  { %v356_v55 = vrot.slane %v284_v53, 2  ;;  %286 = vrot.lane.b32.xlu0 %v284_v53, %s1441_s1 }
 0x49d   :  { %291 = vrot.lane.b32.xlu1 %v290_v54, %s1442_s2 }
 0x49e   :  { %357 = vrot.lane.b32.xlu2 %v356_v55, %s1441_s1 }
 0x4a5   :  { %v1682_v63 = vpop.f32.mrf.mxu0 }
 0x4f8   :  { %v358_v56 = vpop.permute.xlu2 %357 }
 0x4f9   :  { %1250 = vmatmul.msk.f32.vlgmr.msrb.gmra.mxu1 %vm88_vm6, %v358_v56 }
 0x4fa   :  { %722 = vmatpush.msrb.mxu1 %v1547_v36 }
 0x4fc   :  { %723 = vmatpush.msrb.mxu1 %v1552_v37 }
 0x4fe   :  { %724 = vmatpush.msrb.mxu1 %v1559_v38 }
 0x500   :  { %725 = vmatpush.msrb.mxu1 %v1567_v39 }
 0x502   :  { %726 = vmatpush.msrb.mxu1 %v1575_v40 }
 0x504   :  { %727 = vmatpush.msrb.mxu1 %v1583_v41 }
 0x506   :  { %728 = vmatpush.msrb.mxu1 %v1591_v42 }
 0x508   :  { %729 = vmatpush.msrb.mxu1 %v1604_v45 }
 0x50e   :  { %v287_v8 = vpop.permute.xlu0 %286 }
 0x50f   :  { %v292_v10 = vpop.permute.xlu1 %291 }
 0x510   :  { %v294_v57 = vsel %vm88_vm6, %v287_v8, %v292_v10 }
 0x511   :  { %v296_v58 = vrot.slane %v294_v57, 2 }
 0x513   :  { %1248 = vmatmul.msk.f32.vlgmr.msrb.gmra.mxu0 %vm158_vm7, %v296_v58 }
 0x514   :  { %859 = vmatpush.msrb.mxu0 %v1547_v36 }
 0x516   :  { %860 = vmatpush.msrb.mxu0 %v1552_v37 }
 0x518   :  { %861 = vmatpush.msrb.mxu0 %v1559_v38 }
 0x51a   :  { %862 = vmatpush.msrb.mxu0 %v1567_v39 }
 0x51c   :  { %863 = vmatpush.msrb.mxu0 %v1575_v40 }
 0x51e   :  { %864 = vmatpush.msrb.mxu0 %v1583_v41 }
 0x520   :  { %865 = vmatpush.msrb.mxu0 %v1591_v42 }
 0x522   :  { %866 = vmatpush.msrb.mxu0 %v1604_v45 }
 0x576   :  { %v378_v59 = vpop.f32.mrf.mxu1 }
 0x577   :  { %v382_v60 = vrot.slane %v378_v59, 4 }
 0x579   :  { %v384_v61 = vadd.f32 %v382_v60, %v1535_v14 }
 0x57b   :  { %1308 = vtanh.f32 %v384_v61  ;;  %v1251_v6 = vmul.f32 -1.442695, %v384_v61 }
 0x581   :  { %v1309_v62 = vpop.eup %1308 }
 0x582   :  { %410 = vrot.lane.b32.xlu1 %v1309_v62, %s1441_s1 }
 0x590   :  { %v316_v0 = vpop.f32.mrf.mxu0 }
 0x591   :  { %v317_v3 = vadd.f32 %v1635_v48, %v316_v0 }
 0x593   :  { %1310 = vtanh.f32 %v317_v3  ;;  %v1249_v13 = vmul.f32 -1.442695, %v317_v3 }
 0x594   :  { %1312 = vpow2.f32 %v1251_v6 }
 0x599   :  { %v1311_v4 = vpop.eup %1310 }
 0x59a   :  { %341 = vrot.lane.b32.xlu0 %v1311_v4, %s1441_s1  ;;  %v1313_v9 = vpop.eup %1312 }
 0x59b   :  { %v388_v11 = vadd.f32 1.0, %v1313_v9 }
 0x59d   :  { %1314 = vrcp.f32 %v388_v11  ;;  %v400_v21 = vand.u32 2147483648, %v388_v11  ;;  %vm394_vm2 = vweird.f32 %v388_v11  ;;  %v398_v22 = vand.u32 2147483647, %v388_v11 }
 0x59e   :  { %1316 = vpow2.f32 %v1249_v13 }
 0x59f   :  { %v401_v24 = vor.u32 1.1754944e-38, %v400_v21  ;;  %vm399_vm4 = vcmp.eq.f32.partialorder %v398_v22, 8.507059e+37 }
 0x5a3   :  { %v1315_v12 = vpop.eup %1314 }
 0x5a4   :  { %v390_v15 = vmul.f32 %v1315_v12, %v388_v11  ;;  %v1317_v17 = vpop.eup %1316  ;;  %vm395_vm0 = vweird.f32 %v1315_v12 }
 0x5a5   :  { %v322_v19 = vadd.f32 1.0, %v1317_v17  ;;  %vm396_vm3 = vmor %vm394_vm2, %vm395_vm0 }
 0x5a6   :  { %v391_v16 = vsub.f32 1.0, %v390_v15 }
 0x5a7   :  { %1318 = vrcp.f32 %v322_v19  ;;  %v334_v33 = vand.u32 2147483648, %v322_v19  ;;  %vm328_vm8 = vweird.f32 %v322_v19  ;;  %v332_v43 = vand.u32 2147483647, %v322_v19 }
 0x5a8   :  { %v392_v18 = vmul.f32 %v1315_v12, %v391_v16 }
 0x5a9   :  { %v335_v47 = vor.u32 1.1754944e-38, %v334_v33  ;;  %vm333_vm10 = vcmp.eq.f32.partialorder %v332_v43, 8.507059e+37 }
 0x5aa   :  { %v393_v20 = vadd.f32 %v1315_v12, %v392_v18 }
 0x5ac   :  { %v397_v23 = vsel %vm396_vm3, %v1315_v12, %v393_v20 }
 0x5ad   :  { %v402_v25 = vsel %vm399_vm4, %v401_v24, %v397_v23  ;;  %v1319_v28 = vpop.eup %1318 }
 0x5ae   :  { %v324_v29 = vmul.f32 %v1319_v28, %v322_v19  ;;  %vm329_vm5 = vweird.f32 %v1319_v28  ;;  %v408_v52 = vmul.f32 %v406_v51, %v402_v25 }
 0x5af   :  { %vm330_vm9 = vmor %vm328_vm8, %vm329_vm5 }
 0x5b0   :  { %v325_v30 = vsub.f32 1.0, %v324_v29 }
 0x5b2   :  { %v326_v31 = vmul.f32 %v1319_v28, %v325_v30 }
 0x5b4   :  { %v327_v32 = vadd.f32 %v1319_v28, %v326_v31 }
 0x5b6   :  { %v331_v46 = vsel %vm330_vm9, %v1319_v28, %v327_v32 }
 0x5b7   :  { %v336_v34 = vsel %vm333_vm10, %v335_v47, %v331_v46 }
 0x5b8   :  { %v339_v53 = vmul.f32 %v336_v34, %v1647_v35 }
 0x5f4   :  { %v411_v26 = vpop.permute.xlu1 %410 }
 0x5f5   :  { %v413_v27 = vmul.f32 %v411_v26, %v402_v25 }
 0x5f7   :  { %415 = vrot.lane.b32.xlu0 %v413_v27, %s1442_s2 }
 0x60c   :  { %v342_v49 = vpop.permute.xlu0 %341 }
 0x60d   :  { %v344_v50 = vmul.f32 %v342_v49, %v336_v34 }
 0x60f   :  { %346 = vrot.lane.b32.xlu2 %v344_v50, %s1442_s2 }
 0x669   :  { %v416_v54 = vpop.permute.xlu0 %415  ;;  %v347_v55 = vpop.permute.xlu2 %346 }
 0x66a   :  { %v1690_v56 = vadd.f32 %v416_v54, %v408_v52  ;;  %v1692_v8 = vadd.f32 %v347_v55, %v339_v53 }
 0x66c   :  { %1320 = vtanh.f32 %v1690_v56  ;;  %v546_v54 = vrot.slane %v1690_v56, 6 }
 0x66d   :  { %1322 = vtanh.f32 %v1692_v8 }
 0x672   :  { %v1321_v10 = vpop.eup %1320 }
 0x673   :  { %v1323_v57 = vpop.eup %1322  ;;  %421 = vrot.lane.b32.xlu2 %v1321_v10, %s1441_s1 }
 0x674   :  { %352 = vrot.lane.b32.xlu1 %v1323_v57, %s1441_s1 }
 0x6cd   :  { %v422_v44 = vpop.permute.xlu2 %421 }
 0x6ce   :  { %v424_v58 = vmul.f32 %v422_v44, %v402_v25 }
 0x6d0   :  { %v496_v59 = vrot.slane %v424_v58, 4  ;;  %426 = vrot.lane.b32.xlu0 %v424_v58, %s1441_s1 }
 0x6d2   :  { %497 = vrot.lane.b32.xlu2 %v496_v59, %s1441_s1 }
 0x6e6   :  { %v353_v35 = vpop.permute.xlu1 %352 }
 0x6e7   :  { %v355_v60 = vmul.f32 %v353_v35, %v336_v34 }
 0x6e9   :  { %v430_v61 = vrot.slane %v355_v60, 4 }
 0x6eb   :  { %431 = vrot.lane.b32.xlu1 %v430_v61, %s1442_s2 }
 0x72c   :  { %v498_v62 = vpop.permute.xlu2 %497 }
 0x72d   :  { %1254 = vmatmul.msk.f32.vlgmr.msra.gmra.mxu1 %vm88_vm6, %v498_v62 }
 0x72e   :  { %1065 = vmatpush.msra.mxu1 %v1490_v1 }
 0x730   :  { %1066 = vmatpush.msra.mxu1 %v1495_v2 }
 0x732   :  { %1067 = vmatpush.msra.mxu1 %v1504_v5 }
 0x734   :  { %1068 = vmatpush.msra.mxu1 %v1517_v7 }
 0x742   :  { %v427_v0 = vpop.permute.xlu0 %426 }
 0x75d   :  { %v432_v3 = vpop.permute.xlu1 %431 }
 0x75e   :  { %v434_v4 = vsel %vm88_vm6, %v427_v0, %v432_v3 }
 0x75f   :  { %v436_v6 = vrot.slane %v434_v4, 4 }
 0x761   :  { %1252 = vmatmul.msk.f32.vlgmr.msrb.gmra.mxu3 %vm158_vm7, %v436_v6 }
 0x762   :  { %999 = vmatpush.msrb.mxu3 %v1547_v36 }
 0x764   :  { %1000 = vmatpush.msrb.mxu3 %v1552_v37 }
 0x766   :  { %1001 = vmatpush.msrb.mxu3 %v1559_v38 }
 0x768   :  { %1002 = vmatpush.msrb.mxu3 %v1567_v39 }
 0x76a   :  { %1003 = vmatpush.msrb.mxu3 %v1575_v40 }
 0x76c   :  { %1004 = vmatpush.msrb.mxu3 %v1583_v41 }
 0x76e   :  { %1005 = vmatpush.msrb.mxu3 %v1591_v42 }
 0x770   :  { %1006 = vmatpush.msrb.mxu3 %v1604_v45 }
 0x7aa   :  { %v518_v1 = vpop.f32.mrf.mxu1 }
 0x7ab   :  { %v522_v2 = vrot.slane %v518_v1, 2 }
 0x7ad   :  { %v524_v5 = vadd.f32 %v522_v2, %v1535_v14 }
 0x7af   :  { %1324 = vtanh.f32 %v524_v5  ;;  %v1255_v13 = vmul.f32 -1.442695, %v524_v5 }
 0x7b5   :  { %v1325_v7 = vpop.eup %1324 }
 0x7b6   :  { %550 = vrot.lane.b32.xlu0 %v1325_v7, %s1441_s1 }
 0x7e4   :  { %v456_v9 = vpop.f32.mrf.mxu3 }
 0x7e5   :  { %v457_v11 = vadd.f32 %v1635_v48, %v456_v9 }
 0x7e7   :  { %1326 = vtanh.f32 %v457_v11  ;;  %v1253_v28 = vmul.f32 -1.442695, %v457_v11 }
 0x7e8   :  { %1328 = vpow2.f32 %v1255_v13 }
 0x7ed   :  { %v1327_v12 = vpop.eup %1326 }
 0x7ee   :  { %481 = vrot.lane.b32.xlu1 %v1327_v12, %s1441_s1  ;;  %v1329_v15 = vpop.eup %1328 }
 0x7ef   :  { %v528_v16 = vadd.f32 1.0, %v1329_v15 }
 0x7f1   :  { %1330 = vrcp.f32 %v528_v16  ;;  %v540_v21 = vand.u32 2147483648, %v528_v16  ;;  %vm534_vm12 = vweird.f32 %v528_v16  ;;  %v538_v22 = vand.u32 2147483647, %v528_v16 }
 0x7f2   :  { %1332 = vpow2.f32 %v1253_v28 }
 0x7f3   :  { %v541_v24 = vor.u32 1.1754944e-38, %v540_v21  ;;  %vm539_vm14 = vcmp.eq.f32.partialorder %v538_v22, 8.507059e+37 }
 0x7f7   :  { %v1331_v17 = vpop.eup %1330 }
 0x7f8   :  { %v530_v18 = vmul.f32 %v1331_v17, %v528_v16  ;;  %vm535_vm11 = vweird.f32 %v1331_v17  ;;  %v1333_v29 = vpop.eup %1332 }
 0x7f9   :  { %vm536_vm13 = vmor %vm534_vm12, %vm535_vm11  ;;  %v462_v30 = vadd.f32 1.0, %v1333_v29 }
 0x7fa   :  { %v531_v19 = vsub.f32 1.0, %v530_v18 }
 0x7fb   :  { %1334 = vrcp.f32 %v462_v30  ;;  %v474_v47 = vand.u32 2147483648, %v462_v30  ;;  %vm468_vm1 = vweird.f32 %v462_v30  ;;  %v472_v49 = vand.u32 2147483647, %v462_v30 }
 0x7fc   :  { %v532_v14 = vmul.f32 %v1331_v17, %v531_v19 }
 0x7fd   :  { %v475_v50 = vor.u32 1.1754944e-38, %v474_v47  ;;  %vm473_vm2 = vcmp.eq.f32.partialorder %v472_v49, 8.507059e+37 }
 0x7fe   :  { %v533_v20 = vadd.f32 %v1331_v17, %v532_v14 }
 0x800   :  { %v537_v23 = vsel %vm536_vm13, %v1331_v17, %v533_v20 }
 0x801   :  { %v542_v26 = vsel %vm539_vm14, %v541_v24, %v537_v23  ;;  %v1335_v31 = vpop.eup %1334 }
 0x802   :  { %v464_v32 = vmul.f32 %v1335_v31, %v462_v30  ;;  %vm469_vm15 = vweird.f32 %v1335_v31  ;;  %v548_v55 = vmul.f32 %v546_v54, %v542_v26 }
 0x803   :  { %vm470_vm0 = vmor %vm468_vm1, %vm469_vm15 }
 0x804   :  { %v465_v33 = vsub.f32 1.0, %v464_v32 }
 0x806   :  { %v466_v43 = vmul.f32 %v1335_v31, %v465_v33 }
 0x808   :  { %v467_v46 = vadd.f32 %v1335_v31, %v466_v43 }
 0x80a   :  { %v471_v34 = vsel %vm470_vm0, %v1335_v31, %v467_v46 }
 0x80b   :  { %v476_v52 = vsel %vm473_vm2, %v475_v50, %v471_v34 }
 0x80c   :  { %v479_v58 = vmul.f32 %v476_v52, %v1692_v8 }
 0x828   :  { %v551_v25 = vpop.permute.xlu0 %550 }
 0x829   :  { %v553_v27 = vmul.f32 %v551_v25, %v542_v26 }
 0x82b   :  { %555 = vrot.lane.b32.xlu2 %v553_v27, %s1442_s2 }
 0x860   :  { %v482_v51 = vpop.permute.xlu1 %481 }
 0x861   :  { %v484_v53 = vmul.f32 %v482_v51, %v476_v52 }
 0x863   :  { %486 = vrot.lane.b32.xlu0 %v484_v53, %s1442_s2 }
 0x885   :  { %v556_v10 = vpop.permute.xlu2 %555 }
 0x886   :  { %v1723_v57 = vadd.f32 %v556_v10, %v548_v55 }
 0x888   :  { %1336 = vtanh.f32 %v1723_v57  ;;  %v683_v49 = vrot.slane %v1723_v57, 6 }
 0x88e   :  { %v1337_v44 = vpop.eup %1336 }
 0x88f   :  { %561 = vrot.lane.b32.xlu1 %v1337_v44, %s1441_s1 }
 0x8d5   :  { %v487_v59 = vpop.permute.xlu0 %486 }
 0x8d6   :  { %v1728_v35 = vadd.f32 %v487_v59, %v479_v58 }
 0x8d8   :  { %1338 = vtanh.f32 %v1728_v35 }
 0x8de   :  { %v1339_v60 = vpop.eup %1338 }
 0x8df   :  { %492 = vrot.lane.b32.xlu2 %v1339_v60, %s1441_s1 }
 0x901   :  { %v562_v56 = vpop.permute.xlu1 %561 }
 0x902   :  { %v564_v61 = vmul.f32 %v562_v56, %v542_v26 }
 0x904   :  { %v636_v62 = vrot.slane %v564_v61, 6  ;;  %566 = vrot.lane.b32.xlu1 %v564_v61, %s1441_s1 }
 0x906   :  { %637 = vrot.lane.b32.xlu0 %v636_v62, %s1441_s1 }
 0x939   :  { %v493_v0 = vpop.permute.xlu2 %492 }
 0x93a   :  { %v495_v3 = vmul.f32 %v493_v0, %v476_v52 }
 0x93c   :  { %v570_v4 = vrot.slane %v495_v3, 2 }
 0x93e   :  { %571 = vrot.lane.b32.xlu2 %v570_v4, %s1442_s2 }
 0x976   :  { %v567_v6 = vpop.permute.xlu1 %566 }
 0x978   :  { %v638_v8 = vpop.permute.xlu0 %637 }
 0x979   :  { %1258 = vmatmul.msk.f32.vlgmr.msra.gmra.mxu0 %vm88_vm6, %v638_v8 }
 0x998   :  { %v572_v1 = vpop.permute.xlu2 %571 }
 0x999   :  { %v574_v2 = vsel %vm88_vm6, %v567_v6, %v572_v1 }
 0x99a   :  { %v576_v5 = vrot.slane %v574_v2, 6 }
 0x99c   :  { %1256 = vmatmul.msk.f32.vlgmr.msrb.gmra.mxu2 %vm158_vm7, %v576_v5 }
 0x99d   :  { %1139 = vmatpush.msrb.mxu2 %v1547_v36 }
 0x99f   :  { %1140 = vmatpush.msrb.mxu2 %v1552_v37 }
 0x9a1   :  { %1141 = vmatpush.msrb.mxu2 %v1559_v38 }
 0x9a3   :  { %1142 = vmatpush.msrb.mxu2 %v1567_v39 }
 0x9a5   :  { %1143 = vmatpush.msrb.mxu2 %v1575_v40 }
 0x9a7   :  { %1144 = vmatpush.msrb.mxu2 %v1583_v41 }
 0x9a9   :  { %1145 = vmatpush.msrb.mxu2 %v1591_v42 }
 0x9ab   :  { %1146 = vmatpush.msrb.mxu2 %v1604_v45 }
 0x9f6   :  { %v658_v7 = vpop.f32.mrf.mxu0 }
 0x9f7   :  { %v661_v9 = vadd.f32 %v658_v7, %v1682_v63 }
 0x9f9   :  { %1340 = vtanh.f32 %v661_v9  ;;  %v1259_v39 = vmul.f32 -1.442695, %v661_v9 }
 0x9ff   :  { %v1341_v11 = vpop.eup %1340 }
 0xa00   :  { %687 = vrot.lane.b32.xlu0 %v1341_v11, %s1441_s1 }
 0xa1f   :  { %v596_v36 = vpop.f32.mrf.mxu2 }
 0xa20   :  { %v597_v37 = vadd.f32 %v1635_v48, %v596_v36 }
 0xa22   :  { %1342 = vtanh.f32 %v597_v37  ;;  %v1257_v18 = vmul.f32 -1.442695, %v597_v37 }
 0xa23   :  { %1344 = vpow2.f32 %v1259_v39 }
 0xa28   :  { %v1343_v38 = vpop.eup %1342 }
 0xa29   :  { %621 = vrot.lane.b32.xlu1 %v1343_v38, %s1441_s1  ;;  %v1345_v40 = vpop.eup %1344 }
 0xa2a   :  { %v665_v41 = vadd.f32 1.0, %v1345_v40 }
 0xa2c   :  { %1346 = vrcp.f32 %v665_v41  ;;  %v677_v16 = vand.u32 2147483648, %v665_v41  ;;  %vm671_vm4 = vweird.f32 %v665_v41  ;;  %v675_v17 = vand.u32 2147483647, %v665_v41 }
 0xa2d   :  { %1348 = vpow2.f32 %v1257_v18 }
 0xa2e   :  { %v678_v14 = vor.u32 1.1754944e-38, %v677_v16  ;;  %vm676_vm8 = vcmp.eq.f32.partialorder %v675_v17, 8.507059e+37 }
 0xa32   :  { %v1347_v42 = vpop.eup %1346 }
 0xa33   :  { %v667_v45 = vmul.f32 %v1347_v42, %v665_v41  ;;  %vm672_vm3 = vweird.f32 %v1347_v42  ;;  %v1349_v23 = vpop.eup %1348 }
 0xa34   :  { %vm673_vm5 = vmor %vm671_vm4, %vm672_vm3  ;;  %v602_v24 = vadd.f32 1.0, %v1349_v23 }
 0xa35   :  { %v668_v12 = vsub.f32 1.0, %v667_v45 }
 0xa36   :  { %1350 = vrcp.f32 %v602_v24  ;;  %v614_v30 = vand.u32 2147483648, %v602_v24  ;;  %vm608_vm10 = vweird.f32 %v602_v24  ;;  %v612_v31 = vand.u32 2147483647, %v602_v24 }
 0xa37   :  { %v669_v13 = vmul.f32 %v1347_v42, %v668_v12 }
 0xa38   :  { %v615_v33 = vor.u32 1.1754944e-38, %v614_v30  ;;  %vm613_vm12 = vcmp.eq.f32.partialorder %v612_v31, 8.507059e+37 }
 0xa39   :  { %v670_v15 = vadd.f32 %v1347_v42, %v669_v13 }
 0xa3b   :  { %v674_v19 = vsel %vm673_vm5, %v1347_v42, %v670_v15 }
 0xa3c   :  { %v679_v21 = vsel %vm676_vm8, %v678_v14, %v674_v19  ;;  %v1351_v25 = vpop.eup %1350 }
 0xa3d   :  { %v604_v26 = vmul.f32 %v1351_v25, %v602_v24  ;;  %vm609_vm9 = vweird.f32 %v1351_v25  ;;  %v685_v34 = vmul.f32 %v683_v49, %v679_v21 }
 0xa3e   :  { %vm610_vm11 = vmor %vm608_vm10, %vm609_vm9 }
 0xa3f   :  { %v605_v27 = vsub.f32 1.0, %v604_v26 }
 0xa41   :  { %v606_v28 = vmul.f32 %v1351_v25, %v605_v27 }
 0xa43   :  { %v607_v29 = vadd.f32 %v1351_v25, %v606_v28 }
 0xa45   :  { %v611_v32 = vsel %vm610_vm11, %v1351_v25, %v607_v29 }
 0xa46   :  { %v616_v46 = vsel %vm613_vm12, %v615_v33, %v611_v32 }
 0xa47   :  { %v619_v53 = vmul.f32 %v616_v46, %v1728_v35 }
 0xa72   :  { %v688_v20 = vpop.permute.xlu0 %687 }
 0xa73   :  { %v690_v22 = vmul.f32 %v688_v20, %v679_v21 }
 0xa75   :  { %692 = vrot.lane.b32.xlu2 %v690_v22, %s1442_s2 }
 0xa9b   :  { %v622_v43 = vpop.permute.xlu1 %621 }
 0xa9c   :  { %v624_v47 = vmul.f32 %v622_v43, %v616_v46 }
 0xa9e   :  { %626 = vrot.lane.b32.xlu0 %v624_v47, %s1442_s2 }
 0xacf   :  { %v693_v50 = vpop.permute.xlu2 %692 }
 0xad0   :  { %v1753_v51 = vadd.f32 %v693_v50, %v685_v34 }
 0xad2   :  { %1352 = vtanh.f32 %v1753_v51  ;;  %v818_v28 = vrot.slane %v1753_v51, 6 }
 0xad8   :  { %v1353_v52 = vpop.eup %1352 }
 0xad9   :  { %698 = vrot.lane.b32.xlu1 %v1353_v52, %s1441_s1 }
 0xb10   :  { %v627_v54 = vpop.permute.xlu0 %626 }
 0xb11   :  { %v1758_v55 = vadd.f32 %v627_v54, %v619_v53 }
 0xb13   :  { %1354 = vtanh.f32 %v1758_v55 }
 0xb19   :  { %v1355_v10 = vpop.eup %1354 }
 0xb1a   :  { %632 = vrot.lane.b32.xlu2 %v1355_v10, %s1441_s1 }
 0xb4b   :  { %v699_v57 = vpop.permute.xlu1 %698 }
 0xb4c   :  { %v701_v44 = vmul.f32 %v699_v57, %v679_v21 }
 0xb4e   :  { %703 = vrot.lane.b32.xlu0 %v701_v44, %s1441_s1 }
 0xb74   :  { %v633_v58 = vpop.permute.xlu2 %632 }
 0xb75   :  { %v635_v59 = vmul.f32 %v633_v58, %v616_v46 }
 0xb77   :  { %707 = vrot.lane.b32.xlu1 %v635_v59, %s1442_s2 }
 0xbc0   :  { %v704_v60 = vpop.permute.xlu0 %703 }
 0xbc1   :  { %1262 = vmatmul.msk.f32.vlgmr.msra.gmra.mxu3 %vm88_vm6, %v704_v60 }
 0xbe9   :  { %v708_v35 = vpop.permute.xlu1 %707 }
 0xbea   :  { %v710_v56 = vsel %vm88_vm6, %v704_v60, %v708_v35 }
 0xbeb   :  { %1260 = vmatmul.msk.f32.vlgmr.msrb.gmra.mxu1 %vm158_vm7, %v710_v56 }
 0xc44   :  { %v790_v61 = vpop.f32.mrf.mxu3 }
 0xc45   :  { %v794_v62 = vrot.slane %v790_v61, 6 }
 0xc47   :  { %v796_v0 = vadd.f32 %v794_v62, %v1682_v63 }
 0xc49   :  { %1356 = vtanh.f32 %v796_v0  ;;  %v1263_v1 = vmul.f32 -1.442695, %v796_v0 }
 0xc4f   :  { %v1357_v3 = vpop.eup %1356 }
 0xc50   :  { %822 = vrot.lane.b32.xlu2 %v1357_v3, %s1441_s1 }
 0xc68   :  { %v731_v4 = vpop.f32.mrf.mxu1 }
 0xc69   :  { %v732_v8 = vadd.f32 %v1635_v48, %v731_v4 }
 0xc6b   :  { %1358 = vtanh.f32 %v732_v8  ;;  %v1261_v13 = vmul.f32 -1.442695, %v732_v8 }
 0xc6c   :  { %1360 = vpow2.f32 %v1263_v1 }
 0xc71   :  { %v1359_v6 = vpop.eup %1358 }
 0xc72   :  { %756 = vrot.lane.b32.xlu0 %v1359_v6, %s1441_s1  ;;  %v1361_v2 = vpop.eup %1360 }
 0xc73   :  { %v800_v5 = vadd.f32 1.0, %v1361_v2 }
 0xc75   :  { %1362 = vrcp.f32 %v800_v5  ;;  %v812_v38 = vand.u32 2147483648, %v800_v5  ;;  %vm806_vm14 = vweird.f32 %v800_v5  ;;  %v810_v39 = vand.u32 2147483647, %v800_v5 }
 0xc76   :  { %1364 = vpow2.f32 %v1261_v13 }
 0xc77   :  { %v813_v41 = vor.u32 1.1754944e-38, %v812_v38  ;;  %vm811_vm1 = vcmp.eq.f32.partialorder %v810_v39, 8.507059e+37 }
 0xc7b   :  { %v1363_v7 = vpop.eup %1362 }
 0xc7c   :  { %v802_v9 = vmul.f32 %v1363_v7, %v800_v5  ;;  %vm807_vm13 = vweird.f32 %v1363_v7  ;;  %v1365_v15 = vpop.eup %1364 }
 0xc7d   :  { %vm808_vm15 = vmor %vm806_vm14, %vm807_vm13  ;;  %v737_v16 = vadd.f32 1.0, %v1365_v15 }
 0xc7e   :  { %v803_v11 = vsub.f32 1.0, %v802_v9 }
 0xc7f   :  { %1366 = vrcp.f32 %v737_v16  ;;  %v749_v21 = vand.u32 2147483648, %v737_v16  ;;  %vm743_vm2 = vweird.f32 %v737_v16  ;;  %v747_v22 = vand.u32 2147483647, %v737_v16 }
 0xc80   :  { %v804_v36 = vmul.f32 %v1363_v7, %v803_v11 }
 0xc81   :  { %v750_v24 = vor.u32 1.1754944e-38, %v749_v21  ;;  %vm748_vm4 = vcmp.eq.f32.partialorder %v747_v22, 8.507059e+37 }
 0xc82   :  { %v805_v37 = vadd.f32 %v1363_v7, %v804_v36 }
 0xc84   :  { %v809_v40 = vsel %vm808_vm15, %v1363_v7, %v805_v37 }
 0xc85   :  { %v814_v42 = vsel %vm811_vm1, %v813_v41, %v809_v40  ;;  %v1367_v17 = vpop.eup %1366 }
 0xc86   :  { %v739_v18 = vmul.f32 %v1367_v17, %v737_v16  ;;  %vm744_vm0 = vweird.f32 %v1367_v17  ;;  %v820_v29 = vmul.f32 %v818_v28, %v814_v42 }
 0xc87   :  { %vm745_vm3 = vmor %vm743_vm2, %vm744_vm0 }
 0xc88   :  { %v740_v19 = vsub.f32 1.0, %v739_v18 }
 0xc8a   :  { %v741_v14 = vmul.f32 %v1367_v17, %v740_v19 }
 0xc8c   :  { %v742_v20 = vadd.f32 %v1367_v17, %v741_v14 }
 0xc8e   :  { %v746_v23 = vsel %vm745_vm3, %v1367_v17, %v742_v20 }
 0xc8f   :  { %v751_v26 = vsel %vm748_vm4, %v750_v24, %v746_v23 }
 0xc90   :  { %v754_v33 = vmul.f32 %v751_v26, %v1758_v55 }
 0xcaa   :  { %v823_v45 = vpop.permute.xlu2 %822 }
 0xcab   :  { %v825_v12 = vmul.f32 %v823_v45, %v814_v42 }
 0xcad   :  { %827 = vrot.lane.b32.xlu1 %v825_v12, %s1442_s2 }
 0xce4   :  { %v757_v25 = vpop.permute.xlu0 %756 }
 0xce5   :  { %v759_v27 = vmul.f32 %v757_v25, %v751_v26 }
 0xce7   :  { %761 = vrot.lane.b32.xlu2 %v759_v27, %s1442_s2 }
 0xd1f   :  { %v828_v30 = vpop.permute.xlu1 %827 }
 0xd20   :  { %v1774_v31 = vadd.f32 %v828_v30, %v820_v29 }
 0xd22   :  { %1368 = vtanh.f32 %v1774_v31  ;;  %v958_v22 = vrot.slane %v1774_v31, 6 }
 0xd28   :  { %v1369_v32 = vpop.eup %1368 }
 0xd29   :  { %833 = vrot.lane.b32.xlu0 %v1369_v32, %s1441_s1 }
 0xd41   :  { %v762_v43 = vpop.permute.xlu2 %761 }
 0xd42   :  { %v1779_v46 = vadd.f32 %v762_v43, %v754_v33 }
 0xd44   :  { %1370 = vtanh.f32 %v1779_v46 }
 0xd4a   :  { %v1371_v47 = vpop.eup %1370 }
 0xd4b   :  { %767 = vrot.lane.b32.xlu1 %v1371_v47, %s1441_s1 }
 0xd9b   :  { %v834_v49 = vpop.permute.xlu0 %833 }
 0xd9c   :  { %v836_v34 = vmul.f32 %v834_v49, %v814_v42 }
 0xd9e   :  { %v908_v50 = vrot.slane %v836_v34, 2  ;;  %838 = vrot.lane.b32.xlu0 %v836_v34, %s1441_s1 }
 0xda0   :  { %909 = vrot.lane.b32.xlu2 %v908_v50, %s1441_s1 }
 0xdbd   :  { %v768_v51 = vpop.permute.xlu1 %767 }
 0xdbe   :  { %v770_v52 = vmul.f32 %v768_v51, %v751_v26 }
 0xdc0   :  { %v842_v53 = vrot.slane %v770_v52, 6 }
 0xdc2   :  { %843 = vrot.lane.b32.xlu1 %v842_v53, %s1442_s2 }
 0xdfa   :  { %v910_v54 = vpop.permute.xlu2 %909 }
 0xdfb   :  { %1266 = vmatmul.msk.f32.vlgmr.msra.gmra.mxu2 %vm88_vm6, %v910_v54 }
 0xe10   :  { %v839_v55 = vpop.permute.xlu0 %838 }
 0xe34   :  { %v844_v10 = vpop.permute.xlu1 %843 }
 0xe35   :  { %v846_v57 = vsel %vm88_vm6, %v839_v55, %v844_v10 }
 0xe36   :  { %v848_v44 = vrot.slane %v846_v57, 2 }
 0xe38   :  { %1264 = vmatmul.msk.f32.vlgmr.msrb.gmra.mxu0 %vm158_vm7, %v848_v44  ;;  %v1816_v44 = vld [vmem:[%s1858_s4] ss:$0 sm:$0xff] }
 0xe7e   :  { %v930_v58 = vpop.f32.mrf.mxu2 }
 0xe7f   :  { %v934_v59 = vrot.slane %v930_v58, 4 }
 0xe81   :  { %v936_v60 = vadd.f32 %v934_v59, %v1682_v63 }
 0xe83   :  { %1372 = vtanh.f32 %v936_v60  ;;  %v1267_v0 = vmul.f32 -1.442695, %v936_v60 }
 0xe89   :  { %v1373_v35 = vpop.eup %1372 }
 0xe8a   :  { %962 = vrot.lane.b32.xlu0 %v1373_v35, %s1441_s1 }
 0xeb5   :  { %v868_v56 = vpop.f32.mrf.mxu0 }
 0xeb6   :  { %v869_v61 = vadd.f32 %v1635_v48, %v868_v56 }
 0xeb8   :  { %1374 = vtanh.f32 %v869_v61  ;;  %v1265_v1 = vmul.f32 -1.442695, %v869_v61 }
 0xeb9   :  { %1376 = vpow2.f32 %v1267_v0 }
 0xebe   :  { %v1375_v62 = vpop.eup %1374 }
 0xebf   :  { %893 = vrot.lane.b32.xlu2 %v1375_v62, %s1441_s1  ;;  %v1377_v3 = vpop.eup %1376 }
 0xec0   :  { %v940_v4 = vadd.f32 1.0, %v1377_v3 }
 0xec2   :  { %1378 = vrcp.f32 %v940_v4  ;;  %v952_v11 = vand.u32 2147483648, %v940_v4  ;;  %vm946_vm8 = vweird.f32 %v940_v4  ;;  %v950_v48 = vand.u32 2147483647, %v940_v4 }
 0xec3   :  { %1380 = vpow2.f32 %v1265_v1 }
 0xec4   :  { %v953_v38 = vor.u32 1.1754944e-38, %v952_v11  ;;  %vm951_vm10 = vcmp.eq.f32.partialorder %v950_v48, 8.507059e+37 }
 0xec8   :  { %v1379_v8 = vpop.eup %1378 }
 0xec9   :  { %v942_v6 = vmul.f32 %v1379_v8, %v940_v4  ;;  %vm947_vm5 = vweird.f32 %v1379_v8  ;;  %v1381_v9 = vpop.eup %1380 }
 0xeca   :  { %vm948_vm9 = vmor %vm946_vm8, %vm947_vm5  ;;  %v874_v36 = vadd.f32 1.0, %v1381_v9 }
 0xecb   :  { %v943_v2 = vsub.f32 1.0, %v942_v6 }
 0xecc   :  { %1382 = vrcp.f32 %v874_v36  ;;  %v886_v16 = vand.u32 2147483648, %v874_v36  ;;  %vm880_vm12 = vweird.f32 %v874_v36  ;;  %v884_v17 = vand.u32 2147483647, %v874_v36 }
 0xecd   :  { %v944_v5 = vmul.f32 %v1379_v8, %v943_v2 }
 0xece   :  { %v887_v19 = vor.u32 1.1754944e-38, %v886_v16  ;;  %vm885_vm14 = vcmp.eq.f32.partialorder %v884_v17, 8.507059e+37 }
 0xecf   :  { %v945_v7 = vadd.f32 %v1379_v8, %v944_v5 }
 0xed1   :  { %v949_v37 = vsel %vm948_vm9, %v1379_v8, %v945_v7 }
 0xed2   :  { %v954_v40 = vsel %vm951_vm10, %v953_v38, %v949_v37  ;;  %v1383_v42 = vpop.eup %1382 }
 0xed3   :  { %v876_v45 = vmul.f32 %v1383_v42, %v874_v36  ;;  %vm881_vm11 = vweird.f32 %v1383_v42  ;;  %v960_v23 = vmul.f32 %v958_v22, %v954_v40 }
 0xed4   :  { %vm882_vm13 = vmor %vm880_vm12, %vm881_vm11  ;;  %vm1221_vm12 = vcmask 123904  }
 0xed5   :  { %v877_v12 = vsub.f32 1.0, %v876_v45 }
 0xed7   :  { %v878_v13 = vmul.f32 %v1383_v42, %v877_v12 }
 0xed9   :  { %v879_v15 = vadd.f32 %v1383_v42, %v878_v13 }
 0xedb   :  { %v883_v18 = vsel %vm882_vm13, %v1383_v42, %v879_v15 }
 0xedc   :  { %v888_v14 = vsel %vm885_vm14, %v887_v19, %v883_v18 }
 0xedd   :  { %v891_v27 = vmul.f32 %v888_v14, %v1779_v46 }
 0xefc   :  { %v963_v39 = vpop.permute.xlu0 %962 }
 0xefd   :  { %v965_v41 = vmul.f32 %v963_v39, %v954_v40 }
 0xeff   :  { %967 = vrot.lane.b32.xlu2 %v965_v41, %s1442_s2 }
 0xf19   :  { %v894_v20 = vpop.permute.xlu2 %893 }
 0xf1a   :  { %v896_v21 = vmul.f32 %v894_v20, %v888_v14 }
 0xf1c   :  { %898 = vrot.lane.b32.xlu1 %v896_v21, %s1442_s2 }
 0xf59   :  { %v968_v24 = vpop.permute.xlu2 %967 }
 0xf5a   :  { %v1796_v25 = vadd.f32 %v968_v24, %v960_v23 }
 0xf5c   :  { %1384 = vtanh.f32 %v1796_v25  ;;  %v1098_v17 = vrot.slane %v1796_v25, 6 }
 0xf62   :  { %v1385_v26 = vpop.eup %1384 }
 0xf63   :  { %973 = vrot.lane.b32.xlu1 %v1385_v26, %s1441_s1 }
 0xf8e   :  { %v899_v28 = vpop.permute.xlu1 %898 }
 0xf8f   :  { %v1801_v29 = vadd.f32 %v899_v28, %v891_v27 }
 0xf91   :  { %1386 = vtanh.f32 %v1801_v29 }
 0xf97   :  { %v1387_v30 = vpop.eup %1386 }
 0xf98   :  { %904 = vrot.lane.b32.xlu0 %v1387_v30, %s1441_s1 }
 0xfd5   :  { %v974_v31 = vpop.permute.xlu1 %973 }
 0xfd6   :  { %v976_v32 = vmul.f32 %v974_v31, %v954_v40 }
 0xfd8   :  { %v1048_v33 = vrot.slane %v976_v32, 4  ;;  %978 = vrot.lane.b32.xlu2 %v976_v32, %s1441_s1 }
 0xfda   :  { %1049 = vrot.lane.b32.xlu1 %v1048_v33, %s1441_s1 }
0x100a   :  { %v905_v43 = vpop.permute.xlu0 %904 }
0x100b   :  { %v907_v47 = vmul.f32 %v905_v43, %v888_v14 }
0x100d   :  { %v982_v49 = vrot.slane %v907_v47, 4 }
0x100f   :  { %983 = vrot.lane.b32.xlu0 %v982_v49, %s1442_s2 }
0x1032   :  { %v979_v34 = vpop.permute.xlu2 %978 }
0x104c   :  { %v1050_v46 = vpop.permute.xlu1 %1049 }
0x104d   :  { %1270 = vmatmul.msk.f32.vlgmr.msra.gmra.mxu1 %vm88_vm6, %v1050_v46 }
0x1081   :  { %v984_v50 = vpop.permute.xlu0 %983 }
0x1082   :  { %v986_v51 = vsel %vm88_vm6, %v979_v34, %v984_v50 }
0x1083   :  { %v988_v52 = vrot.slane %v986_v51, 4 }
0x1085   :  { %1268 = vmatmul.msk.f32.vlgmr.msrb.gmra.mxu3 %vm158_vm7, %v988_v52 }
0x10ca   :  { %v1070_v53 = vpop.f32.mrf.mxu1 }
0x10cb   :  { %v1074_v54 = vrot.slane %v1070_v53, 2 }
0x10cd   :  { %v1076_v55 = vadd.f32 %v1074_v54, %v1682_v63 }
0x10cf   :  { %1388 = vtanh.f32 %v1076_v55  ;;  %v1271_v60 = vmul.f32 -1.442695, %v1076_v55 }
0x10d5   :  { %v1389_v10 = vpop.eup %1388 }
0x10d6   :  { %1102 = vrot.lane.b32.xlu0 %v1389_v10, %s1441_s1 }
0x1108   :  { %v1008_v57 = vpop.f32.mrf.mxu3 }
0x1109   :  { %v1009_v58 = vadd.f32 %v1816_v44, %v1008_v57 }
0x110b   :  { %1390 = vtanh.f32 %v1009_v58  ;;  %v1269_v3 = vmul.f32 -1.442695, %v1009_v58 }
0x110c   :  { %1392 = vpow2.f32 %v1271_v60 }
0x1111   :  { %v1391_v59 = vpop.eup %1390 }
0x1112   :  { %1033 = vrot.lane.b32.xlu2 %v1391_v59, %s1441_s1  ;;  %v1393_v35 = vpop.eup %1392 }
0x1113   :  { %v1080_v63 = vadd.f32 1.0, %v1393_v35 }
0x1115   :  { %1394 = vrcp.f32 %v1080_v63  ;;  %v1092_v8 = vand.u32 2147483648, %v1080_v63  ;;  %vm1086_vm1 = vweird.f32 %v1080_v63  ;;  %v1090_v6 = vand.u32 2147483647, %v1080_v63 }
0x1116   :  { %1396 = vpow2.f32 %v1269_v3  ;;  %v1190_v3 = vld [vmem:[%s1859_s5 + $0x10] sm:$0xff] }
0x1117   :  { %v1093_v2 = vor.u32 1.1754944e-38, %v1092_v8  ;;  %vm1091_vm2 = vcmp.eq.f32.partialorder %v1090_v6, 8.507059e+37  ;;  %v1188_v8 = vld [vmem:[%s1859_s5] sm:$0xff] }
0x111b   :  { %v1395_v56 = vpop.eup %1394 }
0x111c   :  { %v1082_v61 = vmul.f32 %v1395_v56, %v1080_v63  ;;  %vm1087_vm15 = vweird.f32 %v1395_v56  ;;  %v1397_v9 = vpop.eup %1396 }
0x111d   :  { %vm1088_vm0 = vmor %vm1086_vm1, %vm1087_vm15  ;;  %v1014_v48 = vadd.f32 1.0, %v1397_v9 }
0x111e   :  { %v1083_v62 = vsub.f32 1.0, %v1082_v61 }
0x111f   :  { %1398 = vrcp.f32 %v1014_v48  ;;  %v1026_v41 = vand.u32 2147483648, %v1014_v48  ;;  %vm1020_vm4 = vweird.f32 %v1014_v48  ;;  %v1024_v42 = vand.u32 2147483647, %v1014_v48 }
0x1120   :  { %v1084_v0 = vmul.f32 %v1395_v56, %v1083_v62 }
0x1121   :  { %v1027_v12 = vor.u32 1.1754944e-38, %v1026_v41  ;;  %vm1025_vm8 = vcmp.eq.f32.partialorder %v1024_v42, 8.507059e+37 }
0x1122   :  { %v1085_v4 = vadd.f32 %v1395_v56, %v1084_v0  ;;  %v1191_v0 = vld [vmem:[%s1859_s5 + $0x18] sm:$0xff] }
0x1123   :  { %1213 = vmatpush.msra.mxu0 %v1191_v0 }
0x1124   :  { %v1089_v1 = vsel %vm1088_vm0, %v1395_v56, %v1085_v4  ;;  %v1189_v4 = vld [vmem:[%s1859_s5 + $0x8] sm:$0xff] }
0x1125   :  { %v1094_v7 = vsel %vm1091_vm2, %v1093_v2, %v1089_v1  ;;  %v1399_v36 = vpop.eup %1398  ;;  %1214 = vmatpush.msra.mxu0 %v1190_v3 }
0x1126   :  { %v1016_v37 = vmul.f32 %v1399_v36, %v1014_v48  ;;  %vm1021_vm3 = vweird.f32 %v1399_v36  ;;  %v1100_v18 = vmul.f32 %v1098_v17, %v1094_v7 }
0x1127   :  { %vm1022_vm5 = vmor %vm1020_vm4, %vm1021_vm3  ;;  %1215 = vmatpush.msra.mxu0 %v1189_v4 }
0x1128   :  { %v1017_v38 = vsub.f32 1.0, %v1016_v37 }
0x1129   :  { %1216 = vmatpush.msra.mxu0 %v1188_v8 }
0x112a   :  { %v1018_v39 = vmul.f32 %v1399_v36, %v1017_v38 }
0x112c   :  { %v1019_v40 = vadd.f32 %v1399_v36, %v1018_v39 }
0x112e   :  { %v1023_v45 = vsel %vm1022_vm5, %v1399_v36, %v1019_v40 }
0x112f   :  { %v1028_v15 = vsel %vm1025_vm8, %v1027_v12, %v1023_v45 }
0x1130   :  { %v1031_v21 = vmul.f32 %v1028_v15, %v1801_v29 }
0x1148   :  { %v1103_v5 = vpop.permute.xlu0 %1102 }
0x1149   :  { %v1105_v11 = vmul.f32 %v1103_v5, %v1094_v7  ;;  %v1283_v5 = vld [vmem:[%s1860_s6] ss:$0 sm:$0xff] }
0x114b   :  { %1107 = vrot.lane.b32.xlu2 %v1105_v11, %s1442_s2 }
0x116c   :  { %v1034_v13 = vpop.permute.xlu2 %1033 }
0x116d   :  { %v1036_v16 = vmul.f32 %v1034_v13, %v1028_v15 }
0x116f   :  { %1038 = vrot.lane.b32.xlu1 %v1036_v16, %s1442_s2 }
0x11a5   :  { %v1108_v19 = vpop.permute.xlu2 %1107 }
0x11a6   :  { %v1110_v14 = vadd.f32 %v1108_v19, %v1100_v18 }
0x11a8   :  { %1400 = vtanh.f32 %v1110_v14 }
0x11ae   :  { %v1401_v20 = vpop.eup %1400 }
0x11af   :  { %1113 = vrot.lane.b32.xlu1 %v1401_v20, %s1441_s1 }
0x11e1   :  { %v1039_v22 = vpop.permute.xlu1 %1038 }
0x11e2   :  { %v1041_v23 = vadd.f32 %v1039_v22, %v1031_v21 }
0x11e4   :  { %1402 = vtanh.f32 %v1041_v23 }
0x11ea   :  { %v1403_v24 = vpop.eup %1402 }
0x11eb   :  { %1044 = vrot.lane.b32.xlu0 %v1403_v24, %s1441_s1 }
0x1221   :  { %v1114_v26 = vpop.permute.xlu1 %1113 }
0x1222   :  { %v1116_v27 = vmul.f32 %v1114_v26, %v1094_v7 }
0x1224   :  { %1118 = vrot.lane.b32.xlu2 %v1116_v27, %s1441_s1 }
0x125d   :  { %v1045_v25 = vpop.permute.xlu0 %1044 }
0x125e   :  { %v1047_v28 = vmul.f32 %v1045_v25, %v1028_v15 }
0x1260   :  { %v1122_v30 = vrot.slane %v1047_v28, 2 }
0x1262   :  { %1123 = vrot.lane.b32.xlu0 %v1122_v30, %s1442_s2 }
0x127e   :  { %v1119_v31 = vpop.permute.xlu2 %1118 }
0x12d4   :  { %v1124_v32 = vpop.permute.xlu0 %1123 }
0x12d5   :  { %v1126_v33 = vsel %vm88_vm6, %v1119_v31, %v1124_v32 }
0x12d6   :  { %v1128_v29 = vrot.slane %v1126_v33, 6 }
0x12d8   :  { %1272 = vmatmul.msk.f32.vlgmr.msrb.gmra.mxu2 %vm158_vm7, %v1128_v29 }
0x135b   :  { %v1148_v43 = vpop.f32.mrf.mxu2 }
0x135c   :  { %v1149_v47 = vadd.f32 %v1816_v44, %v1148_v43 }
0x135e   :  { %1404 = vtanh.f32 %v1149_v47  ;;  %v1273_v46 = vmul.f32 -1.442695, %v1149_v47 }
0x1360   :  { %1406 = vpow2.f32 %v1273_v46 }
0x1364   :  { %v1405_v49 = vpop.eup %1404 }
0x1365   :  { %1173 = vrot.lane.b32.xlu1 %v1405_v49, %s1441_s1 }
0x1366   :  { %v1407_v34 = vpop.eup %1406 }
0x1367   :  { %v1154_v50 = vadd.f32 1.0, %v1407_v34 }
0x1369   :  { %1408 = vrcp.f32 %v1154_v50  ;;  %v1166_v10 = vand.u32 2147483648, %v1154_v50  ;;  %vm1160_vm7 = vweird.f32 %v1154_v50  ;;  %v1164_v57 = vand.u32 2147483647, %v1154_v50 }
0x136b   :  { %v1167_v58 = vor.u32 1.1754944e-38, %v1166_v10  ;;  %vm1165_vm11 = vcmp.eq.f32.partialorder %v1164_v57, 8.507059e+37 }
0x136f   :  { %v1409_v51 = vpop.eup %1408 }
0x1370   :  { %v1156_v52 = vmul.f32 %v1409_v51, %v1154_v50  ;;  %vm1161_vm9 = vweird.f32 %v1409_v51 }
0x1371   :  { %vm1162_vm10 = vmor %vm1160_vm7, %vm1161_vm9 }
0x1372   :  { %v1157_v53 = vsub.f32 1.0, %v1156_v52 }
0x1374   :  { %v1158_v54 = vmul.f32 %v1409_v51, %v1157_v53 }
0x1376   :  { %v1159_v55 = vadd.f32 %v1409_v51, %v1158_v54 }
0x1378   :  { %v1163_v44 = vsel %vm1162_vm10, %v1409_v51, %v1159_v55 }
0x1379   :  { %v1168_v60 = vsel %vm1165_vm11, %v1167_v58, %v1163_v44 }
0x137a   :  { %v1171_v63 = vmul.f32 %v1168_v60, %v1041_v23 }
0x13d7   :  { %v1174_v59 = vpop.permute.xlu1 %1173 }
0x13d8   :  { %v1176_v35 = vmul.f32 %v1174_v59, %v1168_v60 }
0x13da   :  { %1178 = vrot.lane.b32.xlu2 %v1176_v35, %s1442_s2 }
0x1434   :  { %v1179_v56 = vpop.permute.xlu2 %1178 }
0x1435   :  { %v1181_v61 = vadd.f32 %v1179_v56, %v1171_v63 }
0x1437   :  { %1410 = vtanh.f32 %v1181_v61 }
0x143d   :  { %v1411_v62 = vpop.eup %1410 }
0x143e   :  { %1184 = vrot.lane.b32.xlu0 %v1411_v62, %s1441_s1 }
0x14b0   :  { %v1185_v6 = vpop.permute.xlu0 %1184 }
0x14b1   :  { %v1187_v1 = vmul.f32 %v1185_v6, %v1168_v60 }
0x14b3   :  { %1197 = vrot.lane.b32.xlu1 %v1187_v1, %s1441_s1 }
0x1525   :  { %v1198_v2 = vpop.permute.xlu1 %1197 }
0x1526   :  { %1274 = vmatmul.msk.f32.vlgmr.msra.gmra.mxu0 %vm88_vm6, %v1198_v2 }
0x15a3   :  { %v1218_v7 = vpop.f32.mrf.mxu0 }
0x15a4   :  { %v1219_v9 = vadd.f32 %v1283_v5, %v1218_v7 }
0x15a6   :  { %1222 = vst.msk [vmem:[#allocation2] sm:$0x3] %vm1221_vm12, %v1219_v9 }
0x15a7   :  { %1233 = dma.vmem_to_hbm [thread:$0]  %s1229_s21, 32, %s1231_s24, [#allocation3]  }
0x15a8   :  { %1437 = dma.done.wait [#allocation3], 32  }
0x15a9   :  { %1438 = vsyncadd [#allocation3], 4294967264 }
0x15aa   :  { %1238 = vsyncpa [#allocation3], 1 }

</bundles_post_ra>
